<compile_context>
chip_gen: v7x
topology: tpu7x:2x2x1
jax: 0.10.0
libtpu: 0.0.40
codegen_flags: <defaults>
</compile_context>

<pallas_src>
import functools

import jax
import jax.numpy as jnp
from jax.experimental import pallas as pl
from jax.experimental.pallas import tpu as pltpu


# Row indices into the packed per-layer vector operand (one DMA per layer).
_BQ, _BK, _BV, _BO, _G2, _BE2, _B2, _G3, _BE3, _B1 = range(10)
_NVEC = 10


# ---------------------------------------------------------------------------
# helpers (used inside the kernel)
# ---------------------------------------------------------------------------
def _layer_norm(x, gamma, beta, eps=1e-6):
    mu = jnp.mean(x, axis=-1, keepdims=True)
    xc = x - mu
    var = jnp.mean(xc * xc, axis=-1, keepdims=True)
    return xc * jax.lax.rsqrt(var + eps) * gamma + beta


# ---------------------------------------------------------------------------
# fused kernel: all layers (cross-attn + LN2 + FFN + LN3) + final LN
# grid = (batch, layer); layer axis carries the activation in VMEM scratch.
# ---------------------------------------------------------------------------
def _encoder_kernel(tgt_ref, ref_ref,
                    wq_ref, wkv_ref, wo_ref, w1_ref, w2_ref,
                    vec_ref, gfbf_ref,
                    out_ref, *rest, nhead, dh, with_attn):
    if with_attn:
        attn_ref, act_ref = rest
    else:
        (act_ref,) = rest

    l = pl.program_id(1)

    @pl.when(l == 0)
    def _init():
        # first layer of this batch element: load activation into scratch
        act_ref[...] = tgt_ref[0]

    x = act_ref[...]                 # (T, D) fp32 resident activation
    r = ref_ref[0]                   # (S, D) fp32 cross-modal reference
    T, D = x.shape
    S = r.shape[0]
    F = w1_ref.shape[-1]
    scale = 1.0 / (dh ** 0.5)

    # --- packed per-layer vectors (single DMA), static slices in-kernel ---
    vecs = vec_ref[0]                                   # (NVEC, P) fp32
    bq = vecs[_BQ:_BQ + 1, :D]
    bk = vecs[_BK:_BK + 1, :D]
    bv = vecs[_BV:_BV + 1, :D]
    bo = vecs[_BO:_BO + 1, :D]
    g2, be2 = vecs[_G2:_G2 + 1, :D], vecs[_BE2:_BE2 + 1, :D]
    g3, be3 = vecs[_G3:_G3 + 1, :D], vecs[_BE3:_BE3 + 1, :D]
    b1 = vecs[_B1:_B1 + 1, :F]
    b2 = vecs[_B2:_B2 + 1, :D]

    xb = x.astype(jnp.bfloat16)
    rb = r.astype(jnp.bfloat16)

    # --- full-width projections (bf16 matmuls, fp32 accumulation) ---
    q2 = jnp.dot(xb, wq_ref[0], preferred_element_type=jnp.float32) + bq   # (T, D)
    kv = jnp.dot(rb, wkv_ref[0], preferred_element_type=jnp.float32)       # (S, 2D)
    k2 = kv[:, :D] + bk                                                    # (S, D)
    v2 = kv[:, D:] + bv                                                    # (S, D)

    # split heads (head-major column order) only for the score/ctx einsums
    q3 = jnp.stack([q2[:, h * dh:(h + 1) * dh] for h in range(nhead)],
                   axis=0).astype(jnp.bfloat16)                            # (H, T, dh)
    k3 = jnp.stack([k2[:, h * dh:(h + 1) * dh] for h in range(nhead)],
                   axis=0).astype(jnp.bfloat16)                            # (H, S, dh)
    v3 = jnp.stack([v2[:, h * dh:(h + 1) * dh] for h in range(nhead)],
                   axis=0).astype(jnp.bfloat16)                            # (H, S, dh)

    s = jnp.einsum('htk,hsk->hts', q3, k3,
                   preferred_element_type=jnp.float32) * scale             # (H, T, S)
    s = s - jnp.max(s, axis=-1, keepdims=True)
    p = jnp.exp(s)
    denom = jnp.sum(p, axis=-1, keepdims=True)
    pn = p * pl.reciprocal(denom, approx=True)                             # ctx path
    ctx = jnp.einsum('hts,hsk->htk', pn.astype(jnp.bfloat16), v3,
                     preferred_element_type=jnp.float32)                   # (H, T, dh)

    if with_attn:
        # torch MultiheadAttention default: head-averaged weights (B, T, S).
        # Exact normalization here (approx reciprocal only on the ctx path).
        attn_ref[0, 0] = jnp.mean(p / denom, axis=0)

    # merge heads, single full-width output projection
    ctx_cat = jnp.concatenate([ctx[h] for h in range(nhead)],
                              axis=-1).astype(jnp.bfloat16)                # (T, D)
    attn_out = jnp.dot(ctx_cat, wo_ref[0],
                       preferred_element_type=jnp.float32) + bo            # (T, D)

    # --- residual + LN2 -> FFN -> residual + LN3 (post-norm) ---
    h2 = _layer_norm(x + attn_out, g2, be2)
    u = jnp.dot(h2.astype(jnp.bfloat16), w1_ref[0],
                preferred_element_type=jnp.float32) + b1
    u = jnp.maximum(u, 0.0)
    f = jnp.dot(u.astype(jnp.bfloat16), w2_ref[0],
                preferred_element_type=jnp.float32) + b2
    y = _layer_norm(h2 + f, g3, be3)
    act_ref[...] = y

    @pl.when(l == pl.num_programs(1) - 1)
    def _final():
        # final LayerNorm of the encoder stack, written once per batch element
        out_ref[0] = _layer_norm(y, gfbf_ref[0:1, :], gfbf_ref[1:2, :])


# ---------------------------------------------------------------------------
# VMEM budget: double-buffered weight blocks + streamed activations + live
# intermediates, with margin for (8,128) tile padding of small operands.
# ---------------------------------------------------------------------------
def _vmem_budget(T, S, D, F, nhead, nvec, p, with_attn):
    bf16, f32 = 2, 4
    weights = 2 * bf16 * (D * D + D * 2 * D + D * D + D * F + F * D)  # 2-deep pipeline
    streams = 2 * f32 * (T * D + S * D + T * D)
    streams += (2 * f32 * T * S) if with_attn else 0
    vectors = 2 * f32 * nvec * p + f32 * 2 * D
    scratch = f32 * T * D
    live = f32 * (3 * nhead * T * S + 2 * T * F + 8 * T * D + 2 * S * D)
    total = weights + streams + vectors + scratch + live
    return int(min(100 * 2 ** 20, int(total * 1.5) + (8 << 20)))


# ---------------------------------------------------------------------------
# wrapper: one pallas_call for the whole encoder stack
# ---------------------------------------------------------------------------
def crossr_encoder(tgt, ref, params, nhead, *, return_attn=True):
    B, T, D = tgt.shape
    S = ref.shape[1]
    L = params["wq"].shape[0]
    dh = D // nhead
    F = params["w1"].shape[-1]
    P = params["vecs"].shape[-1]

    lmap3 = lambda b, l: (l, 0, 0)

    in_specs = [
        pl.BlockSpec((1, T, D), lambda b, l: (b, 0, 0)),   # tgt
        pl.BlockSpec((1, S, D), lambda b, l: (b, 0, 0)),   # ref
        pl.BlockSpec((1, D, D), lmap3),                    # wq
        pl.BlockSpec((1, D, 2 * D), lmap3),                # wkv (K/V fused)
        pl.BlockSpec((1, D, D), lmap3),                    # wo
        pl.BlockSpec((1, D, F), lmap3),                    # w1
        pl.BlockSpec((1, F, D), lmap3),                    # w2
        pl.BlockSpec((1, _NVEC, P), lmap3),                # packed per-layer vectors
        pl.BlockSpec((2, D), lambda b, l: (0, 0)),         # final LN gamma/beta
    ]
    out_specs = [pl.BlockSpec((1, T, D), lambda b, l: (b, 0, 0))]
    out_shape = [jax.ShapeDtypeStruct((B, T, D), jnp.float32)]
    if return_attn:
        out_specs.append(pl.BlockSpec((1, 1, T, S), lambda b, l: (l, b, 0, 0)))
        out_shape.append(jax.ShapeDtypeStruct((L, B, T, S), jnp.float32))

    result = pl.pallas_call(
        functools.partial(_encoder_kernel, nhead=nhead, dh=dh,
                          with_attn=return_attn),
        out_shape=tuple(out_shape),
        grid_spec=pltpu.PrefetchScalarGridSpec(
            num_scalar_prefetch=0,
            grid=(B, L),
            in_specs=in_specs,
            out_specs=tuple(out_specs),
            scratch_shapes=[pltpu.VMEM((T, D), jnp.float32)]),
        compiler_params=pltpu.CompilerParams(
            dimension_semantics=("parallel", "arbitrary"),
            vmem_limit_bytes=_vmem_budget(T, S, D, F, nhead, _NVEC, P,
                                          return_attn)),
    )(tgt, ref,
      params["wq"], params["wkv"], params["wo"], params["w1"], params["w2"],
      params["vecs"], params["gfbf"])

    if return_attn:
        out, attw = result
        cross_attns = [attw[i] for i in range(L)]
    else:
        (out,) = result
        cross_attns = [None] * L
    self_attns = [None] * L   # causal_self=False in the default config
    return out, self_attns, cross_attns


# ---------------------------------------------------------------------------
# parameter init (deterministic, synthetic); weights stored as (in, out).
# K/V weights fused into (D, 2D); biases + LN params packed per layer.
# ---------------------------------------------------------------------------
def init_params(key, num_layers, d_model, d_ffn, nhead):
    D, F, L = d_model, d_ffn, num_layers
    P = max(D, F)
    wq_l, wkv_l, wo_l, w1_l, w2_l, vec_l = [], [], [], [], [], []

    for _ in range(L):
        key, *ks = jax.random.split(key, 13)
        n = lambda k, shape, s=0.05: jax.random.normal(k, shape, jnp.float32) * s
        wq = n(ks[0], (D, D)); bq = n(ks[1], (D,), 0.01)
        wk = n(ks[2], (D, D)); bk = n(ks[3], (D,), 0.01)
        wv = n(ks[4], (D, D)); bv = n(ks[5], (D,), 0.01)
        wo = n(ks[6], (D, D)); bo = n(ks[7], (D,), 0.01)
        w1 = n(ks[8], (D, F)); b1 = n(ks[9], (F,), 0.01)
        w2 = n(ks[10], (F, D)); b2 = n(ks[11], (D,), 0.01)

        wq_l.append(wq)
        wkv_l.append(jnp.concatenate([wk, wv], axis=1))   # (D, 2D)
        wo_l.append(wo)
        w1_l.append(w1)
        w2_l.append(w2)

        pad = lambda v: jnp.pad(v, (0, P - v.shape[0]))
        rows = [None] * _NVEC
        rows[_BQ], rows[_BK], rows[_BV], rows[_BO] = pad(bq), pad(bk), pad(bv), pad(bo)
        rows[_G2] = pad(jnp.ones((D,), jnp.float32))
        rows[_BE2] = pad(jnp.zeros((D,), jnp.float32))
        rows[_B2] = pad(b2)
        rows[_G3] = pad(jnp.ones((D,), jnp.float32))
        rows[_BE3] = pad(jnp.zeros((D,), jnp.float32))
        rows[_B1] = pad(b1)
        vec_l.append(jnp.stack(rows, axis=0))             # (NVEC, P)

    params = {
        # bf16 MXU operands (fp32 accumulation in-kernel)
        "wq": jnp.stack(wq_l).astype(jnp.bfloat16),
        "wkv": jnp.stack(wkv_l).astype(jnp.bfloat16),
        "wo": jnp.stack(wo_l).astype(jnp.bfloat16),
        "w1": jnp.stack(w1_l).astype(jnp.bfloat16),
        "w2": jnp.stack(w2_l).astype(jnp.bfloat16),
        # fp32 vector operands
        "vecs": jnp.stack(vec_l),                                          # (L, NVEC, P)
        "gfbf": jnp.stack([jnp.ones((D,), jnp.float32),
                           jnp.zeros((D,), jnp.float32)], axis=0),         # (2, D)
    }
    return params


if __name__ == "__main__":
    num_layers, nhead, d_ffn, d_model = 2, 4, 64, 32
    B, T, S = 2, 8, 16   # tgt: (B, T, d_model), ref: (B, S, d_model)

    key = jax.random.PRNGKey(0)
    k_tgt, k_ref, k_par = jax.random.split(key, 3)
    tgt = jax.random.normal(k_tgt, (B, T, d_model), jnp.float32)
    ref = jax.random.normal(k_ref, (B, S, d_model), jnp.float32)

    params = init_params(k_par, num_layers, d_model, d_ffn, nhead)

    out, self_attns, cross_attns = crossr_encoder(tgt, ref, params, nhead)

    jax.block_until_ready(out)
    for a in cross_attns:
        jax.block_until_ready(a)

    assert out.shape == (B, T, d_model)
    assert all(a.shape == (B, T, S) for a in cross_attns)
    assert len(self_attns) == num_layers and len(cross_attns) == num_layers
    print("KERNEL_OK")
</pallas_src>

<mosaic_0001>
module attributes {stable_mosaic.version = 11 : i64} {
  func.func @_encoder_kernel(%arg0: i32, %arg1: i32, %arg2: memref<1x8x32xf32, #tpu.memory_space<vmem>>, %arg3: memref<1x16x32xf32, #tpu.memory_space<vmem>>, %arg4: memref<1x32x32xbf16, #tpu.memory_space<vmem>>, %arg5: memref<1x32x64xbf16, #tpu.memory_space<vmem>>, %arg6: memref<1x32x32xbf16, #tpu.memory_space<vmem>>, %arg7: memref<1x32x64xbf16, #tpu.memory_space<vmem>>, %arg8: memref<1x64x32xbf16, #tpu.memory_space<vmem>>, %arg9: memref<1x10x64xf32, #tpu.memory_space<vmem>>, %arg10: memref<2x32xf32, #tpu.memory_space<vmem>>, %arg11: memref<1x8x32xf32, #tpu.memory_space<vmem>>, %arg12: memref<1x1x8x16xf32, #tpu.memory_space<vmem>>, %arg13: memref<8x32xf32, #tpu.memory_space<vmem>>) attributes {dimension_semantics = [#tpu.dimension_semantics<parallel>, #tpu.dimension_semantics<arbitrary>], iteration_bounds = array<i64: 2, 2>, scalar_prefetch = 0 : i64, scratch_operands = 1 : i64, tpu.core_type = #tpu.core_type<tc>, window_params = [{transform_indices = @transform_0, window_bounds = array<i64: 1, 8, 32>}, {transform_indices = @transform_1, window_bounds = array<i64: 1, 16, 32>}, {transform_indices = @transform_2, window_bounds = array<i64: 1, 32, 32>}, {transform_indices = @transform_3, window_bounds = array<i64: 1, 32, 64>}, {transform_indices = @transform_4, window_bounds = array<i64: 1, 32, 32>}, {transform_indices = @transform_5, window_bounds = array<i64: 1, 32, 64>}, {transform_indices = @transform_6, window_bounds = array<i64: 1, 64, 32>}, {transform_indices = @transform_7, window_bounds = array<i64: 1, 10, 64>}, {pipeline_mode = #tpu.pipeline_mode<synchronous>, transform_indices = @transform_8, window_bounds = array<i64: 2, 32>}, {transform_indices = @transform_9, window_bounds = array<i64: 1, 8, 32>}, {transform_indices = @transform_10, window_bounds = array<i64: 1, 1, 8, 16>}]} {
    %c0_i32 = arith.constant 0 : i32
    %0 = arith.cmpi eq, %arg1, %c0_i32 : i32
    %1 = arith.extui %0 : i1 to i32
    %c0_i32_0 = arith.constant 0 : i32
    %2 = arith.cmpi ne, %1, %c0_i32_0 : i32
    scf.if %2 {
      %c0_52 = arith.constant 0 : index
      %c0_53 = arith.constant 0 : index
      %c0_54 = arith.constant 0 : index
      %162 = vector.load %arg2[%c0_52, %c0_53, %c0_54] : memref<1x8x32xf32, #tpu.memory_space<vmem>>, vector<1x8x32xf32>
      %163 = vector.shape_cast %162 : vector<1x8x32xf32> to vector<8x32xf32>
      %c0_55 = arith.constant 0 : index
      %c0_56 = arith.constant 0 : index
      %164 = vector.load %arg13[%c0_55, %c0_56] : memref<8x32xf32, #tpu.memory_space<vmem>>, vector<8x32xf32>
      tpu.vector_store %arg13[%c0_55, %c0_56], %163 {strides = array<i32>} : memref<8x32xf32, #tpu.memory_space<vmem>>, vector<8x32xf32>,
    } else {
    }
    %c0 = arith.constant 0 : index
    %c0_1 = arith.constant 0 : index
    %3 = vector.load %arg13[%c0, %c0_1] : memref<8x32xf32, #tpu.memory_space<vmem>>, vector<8x32xf32>
    %c0_2 = arith.constant 0 : index
    %c0_3 = arith.constant 0 : index
    %c0_4 = arith.constant 0 : index
    %4 = vector.load %arg3[%c0_2, %c0_3, %c0_4] : memref<1x16x32xf32, #tpu.memory_space<vmem>>, vector<1x16x32xf32>
    %5 = vector.shape_cast %4 : vector<1x16x32xf32> to vector<16x32xf32>
    %c0_5 = arith.constant 0 : index
    %c0_6 = arith.constant 0 : index
    %c0_7 = arith.constant 0 : index
    %6 = vector.load %arg9[%c0_5, %c0_6, %c0_7] : memref<1x10x64xf32, #tpu.memory_space<vmem>>, vector<1x10x64xf32>
    %7 = vector.shape_cast %6 : vector<1x10x64xf32> to vector<10x64xf32>
    %8 = vector.extract_strided_slice %7 {offsets = [0, 0], sizes = [1, 32], strides = [1, 1]} : vector<10x64xf32> to vector<1x32xf32>
    %9 = vector.extract_strided_slice %7 {offsets = [1, 0], sizes = [1, 32], strides = [1, 1]} : vector<10x64xf32> to vector<1x32xf32>
    %10 = vector.extract_strided_slice %7 {offsets = [2, 0], sizes = [1, 32], strides = [1, 1]} : vector<10x64xf32> to vector<1x32xf32>
    %11 = vector.extract_strided_slice %7 {offsets = [3, 0], sizes = [1, 32], strides = [1, 1]} : vector<10x64xf32> to vector<1x32xf32>
    %12 = vector.extract_strided_slice %7 {offsets = [4, 0], sizes = [1, 32], strides = [1, 1]} : vector<10x64xf32> to vector<1x32xf32>
    %13 = vector.extract_strided_slice %7 {offsets = [5, 0], sizes = [1, 32], strides = [1, 1]} : vector<10x64xf32> to vector<1x32xf32>
    %14 = vector.extract_strided_slice %7 {offsets = [7, 0], sizes = [1, 32], strides = [1, 1]} : vector<10x64xf32> to vector<1x32xf32>
    %15 = vector.extract_strided_slice %7 {offsets = [8, 0], sizes = [1, 32], strides = [1, 1]} : vector<10x64xf32> to vector<1x32xf32>
    %16 = vector.extract_strided_slice %7 {offsets = [9, 0], sizes = [1, 64], strides = [1, 1]} : vector<10x64xf32> to vector<1x64xf32>
    %17 = vector.extract_strided_slice %7 {offsets = [6, 0], sizes = [1, 32], strides = [1, 1]} : vector<10x64xf32> to vector<1x32xf32>
    %18 = arith.truncf %3 : vector<8x32xf32> to vector<8x32xbf16>
    %19 = arith.truncf %5 : vector<16x32xf32> to vector<16x32xbf16>
    %c0_8 = arith.constant 0 : index
    %c0_9 = arith.constant 0 : index
    %c0_10 = arith.constant 0 : index
    %20 = vector.load %arg4[%c0_8, %c0_9, %c0_10] : memref<1x32x32xbf16, #tpu.memory_space<vmem>>, vector<1x32x32xbf16>
    %21 = vector.shape_cast %20 : vector<1x32x32xbf16> to vector<32x32xbf16>
    %cst = arith.constant dense<0.000000e+00> : vector<8x32xf32>
    %22 = tpu.matmul %18, %21, %cst {dimension_numbers = #tpu.dot_dimension_numbers<[1], [0], [0], [1], [0, 0, 1, 1], [], []>} : vector<8x32xbf16>, vector<32x32xbf16>, vector<8x32xf32> -> vector<8x32xf32>
    %23 = vector.broadcast %8 : vector<1x32xf32> to vector<8x32xf32>
    %24 = arith.addf %22, %23 : vector<8x32xf32>
    %c0_11 = arith.constant 0 : index
    %c0_12 = arith.constant 0 : index
    %c0_13 = arith.constant 0 : index
    %25 = vector.load %arg5[%c0_11, %c0_12, %c0_13] : memref<1x32x64xbf16, #tpu.memory_space<vmem>>, vector<1x32x64xbf16>
    %26 = vector.shape_cast %25 : vector<1x32x64xbf16> to vector<32x64xbf16>
    %cst_14 = arith.constant dense<0.000000e+00> : vector<16x64xf32>
    %27 = tpu.matmul %19, %26, %cst_14 {dimension_numbers = #tpu.dot_dimension_numbers<[1], [0], [0], [1], [0, 0, 1, 1], [], []>} : vector<16x32xbf16>, vector<32x64xbf16>, vector<16x64xf32> -> vector<16x64xf32>
    %28 = vector.extract_strided_slice %27 {offsets = [0, 0], sizes = [16, 32], strides = [1, 1]} : vector<16x64xf32> to vector<16x32xf32>
    %29 = vector.broadcast %9 : vector<1x32xf32> to vector<16x32xf32>
    %30 = arith.addf %28, %29 : vector<16x32xf32>
    %31 = vector.extract_strided_slice %27 {offsets = [0, 32], sizes = [16, 32], strides = [1, 1]} : vector<16x64xf32> to vector<16x32xf32>
    %32 = vector.broadcast %10 : vector<1x32xf32> to vector<16x32xf32>
    %33 = arith.addf %31, %32 : vector<16x32xf32>
    %34 = vector.extract_strided_slice %24 {offsets = [0, 0], sizes = [8, 8], strides = [1, 1]} : vector<8x32xf32> to vector<8x8xf32>
    %35 = vector.extract_strided_slice %24 {offsets = [0, 8], sizes = [8, 8], strides = [1, 1]} : vector<8x32xf32> to vector<8x8xf32>
    %36 = vector.extract_strided_slice %24 {offsets = [0, 16], sizes = [8, 8], strides = [1, 1]} : vector<8x32xf32> to vector<8x8xf32>
    %37 = vector.extract_strided_slice %24 {offsets = [0, 24], sizes = [8, 8], strides = [1, 1]} : vector<8x32xf32> to vector<8x8xf32>
    %38 = vector.shape_cast %34 : vector<8x8xf32> to vector<1x8x8xf32>
    %39 = vector.shape_cast %35 : vector<8x8xf32> to vector<1x8x8xf32>
    %40 = vector.shape_cast %36 : vector<8x8xf32> to vector<1x8x8xf32>
    %41 = vector.shape_cast %37 : vector<8x8xf32> to vector<1x8x8xf32>
    %42 = tpu.concatenate %38, %39, %40, %41 in 0 : vector<1x8x8xf32>, vector<1x8x8xf32>, vector<1x8x8xf32>, vector<1x8x8xf32> -> vector<4x8x8xf32>
    %43 = arith.truncf %42 : vector<4x8x8xf32> to vector<4x8x8xbf16>
    %44 = vector.extract_strided_slice %30 {offsets = [0, 0], sizes = [16, 8], strides = [1, 1]} : vector<16x32xf32> to vector<16x8xf32>
    %45 = vector.extract_strided_slice %30 {offsets = [0, 8], sizes = [16, 8], strides = [1, 1]} : vector<16x32xf32> to vector<16x8xf32>
    %46 = vector.extract_strided_slice %30 {offsets = [0, 16], sizes = [16, 8], strides = [1, 1]} : vector<16x32xf32> to vector<16x8xf32>
    %47 = vector.extract_strided_slice %30 {offsets = [0, 24], sizes = [16, 8], strides = [1, 1]} : vector<16x32xf32> to vector<16x8xf32>
    %48 = vector.shape_cast %44 : vector<16x8xf32> to vector<1x16x8xf32>
    %49 = vector.shape_cast %45 : vector<16x8xf32> to vector<1x16x8xf32>
    %50 = vector.shape_cast %46 : vector<16x8xf32> to vector<1x16x8xf32>
    %51 = vector.shape_cast %47 : vector<16x8xf32> to vector<1x16x8xf32>
    %52 = tpu.concatenate %48, %49, %50, %51 in 0 : vector<1x16x8xf32>, vector<1x16x8xf32>, vector<1x16x8xf32>, vector<1x16x8xf32> -> vector<4x16x8xf32>
    %53 = arith.truncf %52 : vector<4x16x8xf32> to vector<4x16x8xbf16>
    %54 = vector.extract_strided_slice %33 {offsets = [0, 0], sizes = [16, 8], strides = [1, 1]} : vector<16x32xf32> to vector<16x8xf32>
    %55 = vector.extract_strided_slice %33 {offsets = [0, 8], sizes = [16, 8], strides = [1, 1]} : vector<16x32xf32> to vector<16x8xf32>
    %56 = vector.extract_strided_slice %33 {offsets = [0, 16], sizes = [16, 8], strides = [1, 1]} : vector<16x32xf32> to vector<16x8xf32>
    %57 = vector.extract_strided_slice %33 {offsets = [0, 24], sizes = [16, 8], strides = [1, 1]} : vector<16x32xf32> to vector<16x8xf32>
    %58 = vector.shape_cast %54 : vector<16x8xf32> to vector<1x16x8xf32>
    %59 = vector.shape_cast %55 : vector<16x8xf32> to vector<1x16x8xf32>
    %60 = vector.shape_cast %56 : vector<16x8xf32> to vector<1x16x8xf32>
    %61 = vector.shape_cast %57 : vector<16x8xf32> to vector<1x16x8xf32>
    %62 = tpu.concatenate %58, %59, %60, %61 in 0 : vector<1x16x8xf32>, vector<1x16x8xf32>, vector<1x16x8xf32>, vector<1x16x8xf32> -> vector<4x16x8xf32>
    %63 = arith.truncf %62 : vector<4x16x8xf32> to vector<4x16x8xbf16>
    "tpu.trace_start"() <{level = 10 : i32, message = "htk,hsk->hts"}> : () -> ()
    %cst_15 = arith.constant dense<0.000000e+00> : vector<4x8x16xf32>
    %64 = tpu.matmul %43, %53, %cst_15 {dimension_numbers = #tpu.dot_dimension_numbers<[2], [2], [1], [1], [0, 0, 0, 1, 1, 1], [0], [0]>} : vector<4x8x8xbf16>, vector<4x16x8xbf16>, vector<4x8x16xf32> -> vector<4x8x16xf32>
    "tpu.trace_stop"() : () -> ()
    %cst_16 = arith.constant 0.353553385 : f32
    %65 = vector.broadcast %cst_16 : f32 to vector<4x8x16xf32>
    %66 = arith.mulf %64, %65 : vector<4x8x16xf32>
    %cst_17 = arith.constant dense<0xFF800000> : vector<4x8xf32>
    %67 = vector.multi_reduction <maximumf>, %66, %cst_17 [2] : vector<4x8x16xf32> to vector<4x8xf32>
    %68 = vector.shape_cast %67 : vector<4x8xf32> to vector<4x8x1xf32>
    %69 = vector.broadcast %68 : vector<4x8x1xf32> to vector<4x8x16xf32>
    %70 = arith.subf %66, %69 : vector<4x8x16xf32>
    %71 = math.exp %70 : vector<4x8x16xf32>
    %cst_18 = arith.constant dense<0.000000e+00> : vector<4x8xf32>
    %72 = vector.multi_reduction <add>, %71, %cst_18 [2] : vector<4x8x16xf32> to vector<4x8xf32>
    %73 = vector.shape_cast %72 : vector<4x8xf32> to vector<4x8x1xf32>
    %74 = tpu.reciprocal %73 {approx = true} : vector<4x8x1xf32> -> vector<4x8x1xf32>
    %75 = vector.broadcast %74 : vector<4x8x1xf32> to vector<4x8x16xf32>
    %76 = arith.mulf %71, %75 : vector<4x8x16xf32>
    %77 = arith.truncf %76 : vector<4x8x16xf32> to vector<4x8x16xbf16>
    "tpu.trace_start"() <{level = 10 : i32, message = "hts,hsk->htk"}> : () -> ()
    %cst_19 = arith.constant dense<0.000000e+00> : vector<4x8x8xf32>
    %78 = tpu.matmul %77, %63, %cst_19 {dimension_numbers = #tpu.dot_dimension_numbers<[2], [1], [1], [2], [0, 0, 0, 1, 1, 2], [0], [0]>} : vector<4x8x16xbf16>, vector<4x16x8xbf16>, vector<4x8x8xf32> -> vector<4x8x8xf32>
    "tpu.trace_stop"() : () -> ()
    %79 = vector.broadcast %73 : vector<4x8x1xf32> to vector<4x8x16xf32>
    %80 = arith.divf %71, %79 : vector<4x8x16xf32>
    %cst_20 = arith.constant dense<0.000000e+00> : vector<8x16xf32>
    %81 = vector.multi_reduction <add>, %80, %cst_20 [0] : vector<4x8x16xf32> to vector<8x16xf32>
    %cst_21 = arith.constant 4.000000e+00 : f32
    %82 = vector.broadcast %cst_21 : f32 to vector<8x16xf32>
    %83 = arith.divf %81, %82 : vector<8x16xf32>
    %c0_22 = arith.constant 0 : index
    %c0_23 = arith.constant 0 : index
    %c0_24 = arith.constant 0 : index
    %c0_25 = arith.constant 0 : index
    %84 = vector.load %arg12[%c0_22, %c0_23, %c0_24, %c0_25] : memref<1x1x8x16xf32, #tpu.memory_space<vmem>>, vector<1x1x8x16xf32>
    %85 = vector.shape_cast %84 : vector<1x1x8x16xf32> to vector<8x16xf32>
    %86 = vector.shape_cast %83 : vector<8x16xf32> to vector<1x1x8x16xf32>
    tpu.vector_store %arg12[%c0_22, %c0_23, %c0_24, %c0_25], %86 {strides = array<i32>} : memref<1x1x8x16xf32, #tpu.memory_space<vmem>>, vector<1x1x8x16xf32>,
    %87 = vector.extract_strided_slice %78 {offsets = [0, 0, 0], sizes = [1, 8, 8], strides = [1, 1, 1]} : vector<4x8x8xf32> to vector<1x8x8xf32>
    %88 = vector.shape_cast %87 : vector<1x8x8xf32> to vector<8x8xf32>
    %89 = vector.extract_strided_slice %78 {offsets = [1, 0, 0], sizes = [1, 8, 8], strides = [1, 1, 1]} : vector<4x8x8xf32> to vector<1x8x8xf32>
    %90 = vector.shape_cast %89 : vector<1x8x8xf32> to vector<8x8xf32>
    %91 = vector.extract_strided_slice %78 {offsets = [2, 0, 0], sizes = [1, 8, 8], strides = [1, 1, 1]} : vector<4x8x8xf32> to vector<1x8x8xf32>
    %92 = vector.shape_cast %91 : vector<1x8x8xf32> to vector<8x8xf32>
    %93 = vector.extract_strided_slice %78 {offsets = [3, 0, 0], sizes = [1, 8, 8], strides = [1, 1, 1]} : vector<4x8x8xf32> to vector<1x8x8xf32>
    %94 = vector.shape_cast %93 : vector<1x8x8xf32> to vector<8x8xf32>
    %95 = tpu.concatenate %88, %90, %92, %94 in 1 : vector<8x8xf32>, vector<8x8xf32>, vector<8x8xf32>, vector<8x8xf32> -> vector<8x32xf32>
    %96 = arith.truncf %95 : vector<8x32xf32> to vector<8x32xbf16>
    %c0_26 = arith.constant 0 : index
    %c0_27 = arith.constant 0 : index
    %c0_28 = arith.constant 0 : index
    %97 = vector.load %arg6[%c0_26, %c0_27, %c0_28] : memref<1x32x32xbf16, #tpu.memory_space<vmem>>, vector<1x32x32xbf16>
    %98 = vector.shape_cast %97 : vector<1x32x32xbf16> to vector<32x32xbf16>
    %cst_29 = arith.constant dense<0.000000e+00> : vector<8x32xf32>
    %99 = tpu.matmul %96, %98, %cst_29 {dimension_numbers = #tpu.dot_dimension_numbers<[1], [0], [0], [1], [0, 0, 1, 1], [], []>} : vector<8x32xbf16>, vector<32x32xbf16>, vector<8x32xf32> -> vector<8x32xf32>
    %100 = vector.broadcast %11 : vector<1x32xf32> to vector<8x32xf32>
    %101 = arith.addf %99, %100 : vector<8x32xf32>
    %102 = arith.addf %3, %101 : vector<8x32xf32>
    %cst_30 = arith.constant dense<0.000000e+00> : vector<8xf32>
    %103 = vector.multi_reduction <add>, %102, %cst_30 [1] : vector<8x32xf32> to vector<8xf32>
    %104 = vector.shape_cast %103 : vector<8xf32> to vector<8x1xf32>
    %cst_31 = arith.constant 3.200000e+01 : f32
    %105 = vector.broadcast %cst_31 : f32 to vector<8x1xf32>
    %106 = arith.divf %104, %105 : vector<8x1xf32>
    %107 = vector.broadcast %106 : vector<8x1xf32> to vector<8x32xf32>
    %108 = arith.subf %102, %107 : vector<8x32xf32>
    %109 = arith.mulf %108, %108 : vector<8x32xf32>
    %cst_32 = arith.constant dense<0.000000e+00> : vector<8xf32>
    %110 = vector.multi_reduction <add>, %109, %cst_32 [1] : vector<8x32xf32> to vector<8xf32>
    %111 = vector.shape_cast %110 : vector<8xf32> to vector<8x1xf32>
    %cst_33 = arith.constant 3.200000e+01 : f32
    %112 = vector.broadcast %cst_33 : f32 to vector<8x1xf32>
    %113 = arith.divf %111, %112 : vector<8x1xf32>
    %cst_34 = arith.constant 9.99999997E-7 : f32
    %114 = vector.broadcast %cst_34 : f32 to vector<8x1xf32>
    %115 = arith.addf %113, %114 : vector<8x1xf32>
    %116 = math.rsqrt %115 : vector<8x1xf32>
    %117 = vector.broadcast %116 : vector<8x1xf32> to vector<8x32xf32>
    %118 = arith.mulf %108, %117 : vector<8x32xf32>
    %119 = vector.broadcast %12 : vector<1x32xf32> to vector<8x32xf32>
    %120 = arith.mulf %118, %119 : vector<8x32xf32>
    %121 = vector.broadcast %13 : vector<1x32xf32> to vector<8x32xf32>
    %122 = arith.addf %120, %121 : vector<8x32xf32>
    %123 = arith.truncf %122 : vector<8x32xf32> to vector<8x32xbf16>
    %c0_35 = arith.constant 0 : index
    %c0_36 = arith.constant 0 : index
    %c0_37 = arith.constant 0 : index
    %124 = vector.load %arg7[%c0_35, %c0_36, %c0_37] : memref<1x32x64xbf16, #tpu.memory_space<vmem>>, vector<1x32x64xbf16>
    %125 = vector.shape_cast %124 : vector<1x32x64xbf16> to vector<32x64xbf16>
    %cst_38 = arith.constant dense<0.000000e+00> : vector<8x64xf32>
    %126 = tpu.matmul %123, %125, %cst_38 {dimension_numbers = #tpu.dot_dimension_numbers<[1], [0], [0], [1], [0, 0, 1, 1], [], []>} : vector<8x32xbf16>, vector<32x64xbf16>, vector<8x64xf32> -> vector<8x64xf32>
    %127 = vector.broadcast %16 : vector<1x64xf32> to vector<8x64xf32>
    %128 = arith.addf %126, %127 : vector<8x64xf32>
    %cst_39 = arith.constant 0.000000e+00 : f32
    %129 = vector.broadcast %cst_39 : f32 to vector<8x64xf32>
    %130 = arith.maximumf %128, %129 : vector<8x64xf32>
    %131 = arith.truncf %130 : vector<8x64xf32> to vector<8x64xbf16>
    %c0_40 = arith.constant 0 : index
    %c0_41 = arith.constant 0 : index
    %c0_42 = arith.constant 0 : index
    %132 = vector.load %arg8[%c0_40, %c0_41, %c0_42] : memref<1x64x32xbf16, #tpu.memory_space<vmem>>, vector<1x64x32xbf16>
    %133 = vector.shape_cast %132 : vector<1x64x32xbf16> to vector<64x32xbf16>
    %cst_43 = arith.constant dense<0.000000e+00> : vector<8x32xf32>
    %134 = tpu.matmul %131, %133, %cst_43 {dimension_numbers = #tpu.dot_dimension_numbers<[1], [0], [0], [1], [0, 0, 1, 1], [], []>} : vector<8x64xbf16>, vector<64x32xbf16>, vector<8x32xf32> -> vector<8x32xf32>
    %135 = vector.broadcast %17 : vector<1x32xf32> to vector<8x32xf32>
    %136 = arith.addf %134, %135 : vector<8x32xf32>
    %137 = arith.addf %122, %136 : vector<8x32xf32>
    %cst_44 = arith.constant dense<0.000000e+00> : vector<8xf32>
    %138 = vector.multi_reduction <add>, %137, %cst_44 [1] : vector<8x32xf32> to vector<8xf32>
    %139 = vector.shape_cast %138 : vector<8xf32> to vector<8x1xf32>
    %cst_45 = arith.constant 3.200000e+01 : f32
    %140 = vector.broadcast %cst_45 : f32 to vector<8x1xf32>
    %141 = arith.divf %139, %140 : vector<8x1xf32>
    %142 = vector.broadcast %141 : vector<8x1xf32> to vector<8x32xf32>
    %143 = arith.subf %137, %142 : vector<8x32xf32>
    %144 = arith.mulf %143, %143 : vector<8x32xf32>
    %cst_46 = arith.constant dense<0.000000e+00> : vector<8xf32>
    %145 = vector.multi_reduction <add>, %144, %cst_46 [1] : vector<8x32xf32> to vector<8xf32>
    %146 = vector.shape_cast %145 : vector<8xf32> to vector<8x1xf32>
    %cst_47 = arith.constant 3.200000e+01 : f32
    %147 = vector.broadcast %cst_47 : f32 to vector<8x1xf32>
    %148 = arith.divf %146, %147 : vector<8x1xf32>
    %cst_48 = arith.constant 9.99999997E-7 : f32
    %149 = vector.broadcast %cst_48 : f32 to vector<8x1xf32>
    %150 = arith.addf %148, %149 : vector<8x1xf32>
    %151 = math.rsqrt %150 : vector<8x1xf32>
    %152 = vector.broadcast %151 : vector<8x1xf32> to vector<8x32xf32>
    %153 = arith.mulf %143, %152 : vector<8x32xf32>
    %154 = vector.broadcast %14 : vector<1x32xf32> to vector<8x32xf32>
    %155 = arith.mulf %153, %154 : vector<8x32xf32>
    %156 = vector.broadcast %15 : vector<1x32xf32> to vector<8x32xf32>
    %157 = arith.addf %155, %156 : vector<8x32xf32>
    %c0_49 = arith.constant 0 : index
    %c0_50 = arith.constant 0 : index
    %158 = vector.load %arg13[%c0_49, %c0_50] : memref<8x32xf32, #tpu.memory_space<vmem>>, vector<8x32xf32>
    tpu.vector_store %arg13[%c0_49, %c0_50], %157 {strides = array<i32>} : memref<8x32xf32, #tpu.memory_space<vmem>>, vector<8x32xf32>,
    %c1_i32 = arith.constant 1 : i32
    %159 = arith.cmpi eq, %arg1, %c1_i32 : i32
    %160 = arith.extui %159 : i1 to i32
    %c0_i32_51 = arith.constant 0 : i32
    %161 = arith.cmpi ne, %160, %c0_i32_51 : i32
    scf.if %161 {
      %c0_52 = arith.constant 0 : index
      %c0_53 = arith.constant 0 : index
      %162 = vector.load %arg10[%c0_52, %c0_53] : memref<2x32xf32, #tpu.memory_space<vmem>>, vector<1x32xf32>
      %c1 = arith.constant 1 : index
      %c0_54 = arith.constant 0 : index
      %163 = vector.load %arg10[%c1, %c0_54] : memref<2x32xf32, #tpu.memory_space<vmem>>, vector<1x32xf32>
      %cst_55 = arith.constant dense<0.000000e+00> : vector<8xf32>
      %164 = vector.multi_reduction <add>, %157, %cst_55 [1] : vector<8x32xf32> to vector<8xf32>
      %165 = vector.shape_cast %164 : vector<8xf32> to vector<8x1xf32>
      %cst_56 = arith.constant 3.200000e+01 : f32
      %166 = vector.broadcast %cst_56 : f32 to vector<8x1xf32>
      %167 = arith.divf %165, %166 : vector<8x1xf32>
      %168 = vector.broadcast %167 : vector<8x1xf32> to vector<8x32xf32>
      %169 = arith.subf %157, %168 : vector<8x32xf32>
      %170 = arith.mulf %169, %169 : vector<8x32xf32>
      %cst_57 = arith.constant dense<0.000000e+00> : vector<8xf32>
      %171 = vector.multi_reduction <add>, %170, %cst_57 [1] : vector<8x32xf32> to vector<8xf32>
      %172 = vector.shape_cast %171 : vector<8xf32> to vector<8x1xf32>
      %cst_58 = arith.constant 3.200000e+01 : f32
      %173 = vector.broadcast %cst_58 : f32 to vector<8x1xf32>
      %174 = arith.divf %172, %173 : vector<8x1xf32>
      %cst_59 = arith.constant 9.99999997E-7 : f32
      %175 = vector.broadcast %cst_59 : f32 to vector<8x1xf32>
      %176 = arith.addf %174, %175 : vector<8x1xf32>
      %177 = math.rsqrt %176 : vector<8x1xf32>
      %178 = vector.broadcast %177 : vector<8x1xf32> to vector<8x32xf32>
      %179 = arith.mulf %169, %178 : vector<8x32xf32>
      %180 = vector.broadcast %162 : vector<1x32xf32> to vector<8x32xf32>
      %181 = arith.mulf %179, %180 : vector<8x32xf32>
      %182 = vector.broadcast %163 : vector<1x32xf32> to vector<8x32xf32>
      %183 = arith.addf %181, %182 : vector<8x32xf32>
      %c0_60 = arith.constant 0 : index
      %c0_61 = arith.constant 0 : index
      %c0_62 = arith.constant 0 : index
      %184 = vector.load %arg11[%c0_60, %c0_61, %c0_62] : memref<1x8x32xf32, #tpu.memory_space<vmem>>, vector<1x8x32xf32>
      %185 = vector.shape_cast %184 : vector<1x8x32xf32> to vector<8x32xf32>
      %186 = vector.shape_cast %183 : vector<8x32xf32> to vector<1x8x32xf32>
      tpu.vector_store %arg11[%c0_60, %c0_61, %c0_62], %186 {strides = array<i32>} : memref<1x8x32xf32, #tpu.memory_space<vmem>>, vector<1x8x32xf32>,
    } else {
    }
    return
  }
  func.func @transform_0(%arg0: i32, %arg1: i32) -> (i32, i32, i32) {
    %c0_i32 = arith.constant 0 : i32
    %c0_i32_0 = arith.constant 0 : i32
    %c0_i32_1 = arith.constant 0 : i32
    return %arg0, %c0_i32, %c0_i32_0 : i32, i32, i32
  }
  func.func @transform_1(%arg0: i32, %arg1: i32) -> (i32, i32, i32) {
    %c0_i32 = arith.constant 0 : i32
    %c0_i32_0 = arith.constant 0 : i32
    %c0_i32_1 = arith.constant 0 : i32
    return %arg0, %c0_i32, %c0_i32_0 : i32, i32, i32
  }
  func.func @transform_2(%arg0: i32, %arg1: i32) -> (i32, i32, i32) {
    %c0_i32 = arith.constant 0 : i32
    %c0_i32_0 = arith.constant 0 : i32
    %c0_i32_1 = arith.constant 0 : i32
    return %arg1, %c0_i32, %c0_i32_0 : i32, i32, i32
  }
  func.func @transform_3(%arg0: i32, %arg1: i32) -> (i32, i32, i32) {
    %c0_i32 = arith.constant 0 : i32
    %c0_i32_0 = arith.constant 0 : i32
    %c0_i32_1 = arith.constant 0 : i32
    return %arg1, %c0_i32, %c0_i32_0 : i32, i32, i32
  }
  func.func @transform_4(%arg0: i32, %arg1: i32) -> (i32, i32, i32) {
    %c0_i32 = arith.constant 0 : i32
    %c0_i32_0 = arith.constant 0 : i32
    %c0_i32_1 = arith.constant 0 : i32
    return %arg1, %c0_i32, %c0_i32_0 : i32, i32, i32
  }
  func.func @transform_5(%arg0: i32, %arg1: i32) -> (i32, i32, i32) {
    %c0_i32 = arith.constant 0 : i32
    %c0_i32_0 = arith.constant 0 : i32
    %c0_i32_1 = arith.constant 0 : i32
    return %arg1, %c0_i32, %c0_i32_0 : i32, i32, i32
  }
  func.func @transform_6(%arg0: i32, %arg1: i32) -> (i32, i32, i32) {
    %c0_i32 = arith.constant 0 : i32
    %c0_i32_0 = arith.constant 0 : i32
    %c0_i32_1 = arith.constant 0 : i32
    return %arg1, %c0_i32, %c0_i32_0 : i32, i32, i32
  }
  func.func @transform_7(%arg0: i32, %arg1: i32) -> (i32, i32, i32) {
    %c0_i32 = arith.constant 0 : i32
    %c0_i32_0 = arith.constant 0 : i32
    %c0_i32_1 = arith.constant 0 : i32
    return %arg1, %c0_i32, %c0_i32_0 : i32, i32, i32
  }
  func.func @transform_8(%arg0: i32, %arg1: i32) -> (i32, i32) {
    %c0_i32 = arith.constant 0 : i32
    %c0_i32_0 = arith.constant 0 : i32
    %c0_i32_1 = arith.constant 0 : i32
    return %c0_i32, %c0_i32_0 : i32, i32
  }
  func.func @transform_9(%arg0: i32, %arg1: i32) -> (i32, i32, i32) {
    %c0_i32 = arith.constant 0 : i32
    %c0_i32_0 = arith.constant 0 : i32
    %c0_i32_1 = arith.constant 0 : i32
    return %arg0, %c0_i32, %c0_i32_0 : i32, i32, i32
  }
  func.func @transform_10(%arg0: i32, %arg1: i32) -> (i32, i32, i32, i32) {
    %c0_i32 = arith.constant 0 : i32
    %c0_i32_0 = arith.constant 0 : i32
    %c0_i32_1 = arith.constant 0 : i32
    return %arg1, %arg0, %c0_i32, %c0_i32_0 : i32, i32, i32, i32
  }
}

</mosaic_0001>

<bundles_post_ra>
// kernel: tpu_custom_call.1
= control target key start
LH: loop header
LB: loop body
LE: loop exit
PB: predicated region body
PF: predicated region fallthrough
CT: control target
= control target key end

     0   :  { %s3045_s0 = inlined_call_operand.hbm [shape: f32[2,8,32], index: 0, kind: input, shape index: {}]   ;;  %s3046_s1 = inlined_call_operand.vmem [shape: f32[2,16,32], index: 1, kind: input, shape index: {}]   ;;  %s3047_s2 = inlined_call_operand.vmem [shape: bf16[2,32,32], index: 2, kind: input, shape index: {}]   ;;  %s3048_s3 = inlined_call_operand.vmem [shape: bf16[2,32,64], index: 3, kind: input, shape index: {}]   ;;  %s3049_s4 = inlined_call_operand.vmem [shape: bf16[2,32,32], index: 4, kind: input, shape index: {}]   ;;  %s3050_s5 = inlined_call_operand.hbm [shape: bf16[2,32,64], index: 5, kind: input, shape index: {}]   ;;  %s3051_s6 = inlined_call_operand.vmem [shape: bf16[2,64,32], index: 6, kind: input, shape index: {}]   ;;  %s3052_s7 = inlined_call_operand.vmem [shape: f32[2,10,64], index: 7, kind: input, shape index: {}]   ;;  %s3053_s8 = inlined_call_operand.vmem [shape: f32[2,32], index: 8, kind: input, shape index: {}]   ;;  %s3054_s9 = inlined_call_operand.hbm [shape: f32[2,8,32], index: 9, kind: output, shape index: {0}]   ;;  %s3055_s10 = inlined_call_operand.hbm [shape: f32[2,2,8,16], index: 10, kind: output, shape index: {1}]  }
   0x1   :  { %3083 = sst [smem:[#allocation34_spill]] %s3045_s0 }
   0x2   :  { %3084 = sst [smem:[#allocation35_spill]] %s3046_s1 }
   0x3   :  { %3085 = sst [smem:[#allocation36_spill]] %s3047_s2 }
   0x4   :  { %3086 = sst [smem:[#allocation37_spill]] %s3048_s3 }
   0x5   :  { %3087 = sst [smem:[#allocation38_spill]] %s3049_s4 }
   0x6   :  { %3088 = sst [smem:[#allocation39_spill]] %s3050_s5 }
   0x7   :  { %3089 = sst [smem:[#allocation40_spill]] %s3051_s6 }
   0x8   :  { %3090 = sst [smem:[#allocation41_spill]] %s3052_s7 }
   0x9   :  { %3091 = sst [smem:[#allocation42_spill]] %s3053_s8 }
   0xa   :  { %3092 = sst [smem:[#allocation43_spill]] %s3054_s9 }
   0xb   :  { %3093 = sst [smem:[#allocation44_spill]] %s3055_s10 }
   0xc   :  { %16 = vsyncpa [#allocation4], 0 }
   0xd   :  { %18 = vsyncpa [#allocation4 + $0x1], 0 }
   0xe   :  { %19 = vsyncpa [#allocation7], 0 }
   0xf   :  { %21 = vsyncpa [#allocation7 + $0x1], 0 }
  0x10   :  { %22 = vsyncpa [#allocation5], 0 }
  0x11   :  { %24 = vsyncpa [#allocation5 + $0x1], 0 }
  0x12   :  { %25 = vsyncpa [#allocation10], 0 }
  0x13   :  { %27 = vsyncpa [#allocation10 + $0x1], 0  ;;  %s2492_s13 = smov 0   ;;  %s2494_s14 = smov 0  }
  0x14   :  { %s2496_s15 = smov 0   ;;  %s2498_s16 = smov 0  }
  0x15   :  { %s2500_s17 = smov 0   ;;  %s2502_s18 = smov 0  }
  0x16   :  { %s2504_s19 = smov 0   ;;  %s2506_s20 = smov 0  }
  0x17   :  { %s2508_s21 = smov 0   ;;  %s2510_s22 = smov 0  }
  0x18   :  { %s2512_s23 = smov 0   ;;  %s2514_s24 = smov 0  }
  0x19   :  { %s2516_s25 = smov 0   ;;  %s2518_s26 = smov 0  }
  0x1a LB: > { %3094 = sst [smem:[#allocation15_spill]] %s2367_s13  ;;  %s1771_s27 = sadd.s32 4294967295, %s2419_s26   ;;  %s2419_s26 = sphi %s2518_s26, %s33_s26   ;;  %s2415_s25 = sphi %s2516_s25, %s3166_s25   ;;  %s2411_s24 = sphi %s2514_s24, %s3165_s24   ;;  %s2407_s23 = sphi %s2512_s23, %s3164_s23   ;;  %s2403_s22 = sphi %s2510_s22, %s3163_s22   ;;  %s2399_s21 = sphi %s2508_s21, %s3162_s21   ;;  %s2395_s20 = sphi %s2506_s20, %s3161_s20   ;;  %s2391_s19 = sphi %s2504_s19, %s3169_s19   ;;  %s2387_s18 = sphi %s2502_s18, %s3159_s18   ;;  %s2383_s17 = sphi %s2500_s17, %s3158_s17   ;;  %s2379_s16 = sphi %s2498_s16, %s3157_s16   ;;  %s2375_s15 = sphi %s2496_s15, %s3156_s15   ;;  %s2371_s14 = sphi %s2494_s14, %s3168_s14   ;;  %s2367_s13 = sphi %s2492_s13, %s3167_s13  }
  0x1b   : > { %3095 = sst [smem:[#allocation16_spill]] %s2375_s15  ;;  %s1772_s28 = sadd.s32 4294967294, %s2419_s26  }
  0x1c   : > { %3096 = sst [smem:[#allocation17_spill]] %s2383_s17  ;;  %p59_p0 = scmp.ne.s32.totalorder %s2399_s21, %s2395_s20 }
  0x1d   : > { %3097 = sst [smem:[#allocation18_spill]] %s2387_s18  ;;  %p60_p1 = scmp.eq.s32.totalorder %s2419_s26, 0 }
  0x1e   : > { %3098 = sst [smem:[#allocation19_spill]] %s2391_s19  ;;  %p65_p2 = scmp.ne.s32.totalorder %s2395_s20, %s2391_s19 }
  0x1f   : > { %3099 = sst [smem:[#allocation20_spill]] %s2395_s20  ;;  %p66_p3 = scmp.eq.s32.totalorder %s1771_s27, 0 }
  0x20   : > { %3100 = sst [smem:[#allocation21_spill]] %s2399_s21  ;;  %p2569_p4 = por %p60_p1, %p59_p0 }
  0x21   : > { %3101 = sst [smem:[#allocation22_spill]] %s2411_s24  ;;  %p189_p5 = scmp.ne.s32.totalorder %s2387_s18, %s2383_s17 }
  0x22   : > { %3102 = sst [smem:[#allocation23_spill]] %s2415_s25  ;;  %p2575_p6 = por %p66_p3, %p65_p2 }
  0x23   : > { %3103 = sst [smem:[#allocation24_spill]] %s2419_s26  ;;  %p195_p7 = scmp.ne.s32.totalorder %s2383_s17, %s2379_s16 }
  0x24   : > { %s3105_s12 = scalar_select %p2575_p6, 1, 0 }
  0x25   : > { %p2580_p8 = por %p189_p5, %p60_p1  ;;  %p292_p9 = scmp.eq.s32.totalorder %s1771_s27, 3 }
  0x26   : > { %p2584_p10 = por %p195_p7, %p66_p3  ;;  %p298_p11 = scmp.eq.s32.totalorder %s1772_s28, 3 }
  0x27   : > { %p2588_p12 = por %p292_p9, %p59_p0  ;;  %p319_p13 = scmp.ne.s32.totalorder %s2375_s15, %s2371_s14 }
  0x28   : > { %s3107_s29 = scalar_select %p2584_p10, 1, 0 }
  0x29   : > { %s3108_s19 = scalar_select %p2588_p12, 1, 0 }
  0x2a   : > { %p2594_p6 = por %p298_p11, %p65_p2  ;;  %p325_p1 = scmp.ne.s32.totalorder %s2371_s14, %s2367_s13 }
  0x2b   : > { %3109 = sst [smem:[#allocation25_spill]] %s3108_s19  ;;  %p2600_p5 = por %p319_p13, %p292_p9 }
  0x2c   : > { %s3110_s16 = scalar_select %p2594_p6, 1, 0 }
  0x2d   : > { %s3112_s27 = scalar_select %p2600_p5, 1, 0 }
  0x2e   : > { %3111 = sst [smem:[#allocation26_spill]] %s3110_s16  ;;  %p2604_p3 = por %p325_p1, %p298_p11 }
  0x2f   : > { %3113 = sst [smem:[#allocation27_spill]] %s3112_s27  ;;  %p1987_p7 = scmp.lt.s32.totalorder %s2419_s26, 4 }
  0x30   : > { %s3114_s10 = scalar_select %p2604_p3, 1, 0 }
  0x31   : > { %s349_s28 = sand.u32 1, %s2399_s21   ;;  %s1776_s9 = sshll.u32 %s2415_s25, 7 }
  0x32   : > { %3115 = sst [smem:[#allocation28_spill]] %s3114_s10  ;;  %s1775_s8 = sshll.u32 %s349_s28, 3 }
  0x33   : > { %s3116_s0 = sld [smem:[#allocation34_spill]]  ;;  %s353_s13 = scalar_lea.vmem [#allocation3], %s1775_s8 }
  0x34   : > { %s360_s16 = sshll.u32 %s353_s13, 4  ;;  %p2618_p0 = pnand %p1987_p7, %p2569_p4  ;;  %s2622_s16 = int_to_ptr.vmem [resolvable:$true] %s360_s16 }
  0x35   : > { %p2626_p2 = pnand %p1987_p7, %p2580_p8 }
  0x36   : > { %p2179_p13 = pneg %p2618_p0 }
  0x39   : > { %s2614_s6 = scalar_lea.hbm %s3116_s0, %s1776_s9  ;;  %s350_s9 = scalar_lea.sflag [#allocation4], %s349_s28 }
  0x3a   : > { %s2177_s19 = scalar_lea.hbm %s2614_s6, 128  ;;  %s2182_s11 = scalar_lea.hbm %s3116_s0, 256 }
  0x3b   : > { %p2178_p11 = scmp.ne.s32.totalorder %s2614_s6, %s2177_s19  ;;  %p2183_p8 = scmp.lt.u32.totalorder %s2614_s6, %s3116_s0 }
  0x3c   : > { %p2184_p7 = scmp.lt.u32.totalorder %s2182_s11, %s2177_s19  ;;  %p2186_p9 = scmp.lt.u32.totalorder %s2177_s19, %s2614_s6 }
  0x3d   : > { %p2180_p4 = pnand %p2179_p13, %p2178_p11 }
  0x3e   : > { %p2185_p3 = por %p2184_p7, %p2183_p8 }
  0x3f   : > { %p2181_p1 = pneg %p2180_p4 }
  0x40   : > { %p2187_p6 = por %p2186_p9, %p2185_p3 }
  0x42   : > { %p2188_p5 = pnand %p2187_p6, %p2181_p1 }
  0x44   : > { %2191 = shalt.err (!%p2188_p5)
}
  0x45   : > { %s2192_s28 = scalar_lea.vmem %s2622_s16, 128  ;;  %s2421_s8 = smov [#allocation3]  }
  0x46   : > { %p2193_p11 = scmp.ne.s32.totalorder %s2622_s16, %s2192_s28  ;;  %s2197_s13 = sshll.u32 %s2421_s8, 4  ;;  %s2198_s13 = int_to_ptr.vmem [resolvable:$false] %s2197_s13 }
  0x47   : > { %s2199_s10 = scalar_lea.vmem %s2198_s13, 256  ;;  %p2200_p10 = scmp.lt.s32.totalorder %s2622_s16, %s2198_s13 }
  0x48   : > { %p2195_p4 = pnand %p2193_p11, %p2179_p13  ;;  %p2201_p8 = scmp.lt.s32.totalorder %s2199_s10, %s2192_s28 }
  0x4a   : > { %p2196_p12 = pneg %p2195_p4  ;;  %p2202_p7 = por %p2201_p8, %p2200_p10 }
  0x4c   : > { %p2203_p3 = pnand %p2202_p7, %p2196_p12 }
  0x4e   : > { %2206 = shalt.err (!%p2203_p3)
}
  0x4f   : > { %1976 = dma.hbm_to_vmem [thread:$0]  (!%p2618_p0), %s2614_s6, 128, %s2622_s16, %s350_s9  }
  0x50   : > { %p434_p6 = scmp.lt.s32.totalorder %s2419_s26, 5  ;;  %s182_s19 = sadd.s32 1, %s2387_s18 }
  0x51   : > { %p3119_p10 = scmp.ge.s32.totalorder %s2419_s26, 1  ;;  %s42_s27 = sadd.s32 1, %s2411_s24 }
  0x52   : > { %s309_s30 = sadd.s32 1, %s2375_s15  ;;  %p43_p5 = scmp.ge.s32.totalorder %s42_s27, 2 }
  0x53   : > { %p2660_p12 = pnand %p3119_p10, %p434_p6  ;;  %s399_s28 = sand.u32 1, %s2387_s18  }
  0x54   : > { %s1777_s8 = sshll.u32 %s399_s28, 4  ;;  %s3171_s27 = smov (%p43_p5, %s42_s27), 0 }
  0x55   : > { %3121 = sst [smem:[#allocation29_spill]] %s3171_s27  ;;  %s3122_s13 = sadd.s32 1, %s2415_s25 }
  0x56   : > { %s3173_s13 = smov (!%p43_p5, %s3122_s13), %s2415_s25  ;;  %s179_s6 = ssub.s32 %s2411_s24, %s3171_s27 }
  0x57   : > { %p47_p0 = scmp.ge.s32.totalorder %s3173_s13, 2  ;;  %p180_p9 = scmp.eq.s32.totalorder %s179_s6, 0 }
  0x58   : > { %s1833_s16 = sshll.u32 %s2411_s24, 8  ;;  %s403_s9 = scalar_lea.vmem [#allocation6], %s1777_s8 }
  0x59   : > { %s410_s10 = sshll.u32 %s403_s9, 4  ;;  %s3175_s13 = smov (%p47_p0, %s3173_s13), 0  ;;  %s2687_s10 = int_to_ptr.vmem [resolvable:$true] %s410_s10 }
  0x5a   : > { %3123 = sst [smem:[#allocation30_spill]] %s3175_s13  ;;  %s49_s26 = ssub.s32 %s2415_s25, %s3175_s13 }
  0x5b   : > { %s2678_s0 = scalar_select %p180_p9, %s2387_s18, %s182_s19  }
  0x5c   : > { %s3125_s5 = sld [smem:[#allocation39_spill]]  ;;  %p50_p13 = scmp.eq.s32.totalorder %s49_s26, 0 }
  0x5d   : > { %3124 = sst [smem:[#allocation31_spill]] %s2678_s0  ;;  %s306_s27 = sor.u32 %s179_s6, %s49_s26 }
  0x5e   : > { %p307_p1 = scmp.eq.s32.totalorder %s306_s27, 0  ;;  %s3126_s8 = sadd.s32 1, %s2399_s21 }
  0x5f   : > { %s2692_s9 = scalar_select %p50_p13, %s2399_s21, %s3126_s8  }
  0x60   : > { %s2695_s19 = scalar_select %p307_p1, %s2375_s15, %s309_s30  }
  0x61   : > { %3127 = sst [smem:[#allocation32_spill]] %s2692_s9  ;;  %s2697_s13 = scalar_lea.sflag [#allocation7], %s399_s28 }
  0x62   : > { %s2685_s2 = scalar_lea.hbm %s3125_s5, %s1833_s16  ;;  %3128 = sst [smem:[#allocation33_spill]] %s2695_s19 }
  0x63   : > { %s2207_s25 = scalar_lea.hbm %s2685_s2, 256  ;;  %p2209_p4 = pneg %p2626_p2 }
  0x64   : > { %p2208_p11 = scmp.ne.s32.totalorder %s2685_s2, %s2207_s25  ;;  %s2212_s26 = scalar_lea.hbm %s3125_s5, 512 }
  0x65   : > { %p2213_p3 = scmp.lt.u32.totalorder %s2685_s2, %s3125_s5  ;;  %p2214_p6 = scmp.lt.u32.totalorder %s2212_s26, %s2207_s25 }
  0x66   : > { %p2210_p8 = pnand %p2209_p4, %p2208_p11  ;;  %p2216_p5 = scmp.lt.u32.totalorder %s2207_s25, %s2685_s2 }
  0x67   : > { %p2215_p10 = por %p2214_p6, %p2213_p3 }
  0x68   : > { %p2211_p7 = pneg %p2210_p8 }
  0x69   : > { %p2217_p0 = por %p2216_p5, %p2215_p10 }
  0x6b   : > { %p2218_p9 = pnand %p2217_p0, %p2211_p7 }
  0x6d   : > { %2221 = shalt.err (!%p2218_p9)
}
  0x6e   : > { %s2222_s30 = scalar_lea.vmem %s2687_s10, 256  ;;  %s2422_s28 = smov [#allocation6]  }
  0x6f   : > { %p2223_p13 = scmp.ne.s32.totalorder %s2687_s10, %s2222_s30  ;;  %s2227_s16 = sshll.u32 %s2422_s28, 4  ;;  %s2228_s16 = int_to_ptr.vmem [resolvable:$false] %s2227_s16 }
  0x70   : > { %s2229_s8 = scalar_lea.vmem %s2228_s16, 512  ;;  %p2230_p8 = scmp.lt.s32.totalorder %s2687_s10, %s2228_s16 }
  0x71   : > { %p2225_p1 = pnand %p2223_p13, %p2209_p4  ;;  %p2231_p3 = scmp.lt.s32.totalorder %s2229_s8, %s2222_s30 }
  0x73   : > { %p2226_p11 = pneg %p2225_p1  ;;  %p2232_p6 = por %p2231_p3, %p2230_p8 }
  0x75   : > { %p2233_p10 = pnand %p2232_p6, %p2226_p11 }
  0x77   : > { %2236 = shalt.err (!%p2233_p10)
}
  0x78   : > { %s2423_s25 = smov 64   ;;  %s2424_s3 = smov 4  }
  0x79   : > { %1979 = dma.hbm_to_vmem [thread:$0]  (!%p2626_p2), %s2685_s2, 256, %s2687_s10, %s2697_s13, %s2423_s25, %s2423_s25, %s2424_s3  }
  0x7a   : > { %438 = sbr.rel (%p2660_p12) target bundleno = 3028 (0xbd4), region = 56  ;;  %s2728_s4 = sand.u32 (!%p2660_p12), 1, %s2395_s20  }
  0x7b   : > { %s1781_s26 = sshll.u32 (!%p2660_p12), %s2728_s4, 3  ;;  %s441_s27 = scalar_lea.sflag (!%p2660_p12), [#allocation4], %s2728_s4 }
  0x7c   : > { %s444_s6 = scalar_lea.vmem (!%p2660_p12), [#allocation3], %s1781_s26  ;;  %p3129_p4 = scmp.ne.s32.totalorder (!%p2660_p12), %s3105_s12, 0 }
  0x81   : > { %2350 = dma.done.wait (%p3129_p4), %s441_s27, 128  }
  0x82   : > { %2352 = vsyncadd (%p3129_p4), %s441_s27, 4294967168  ;;  %s449_s2 = sand.u32 1, %s2383_s17   ;;  %p3130_p2 = scmp.ne.s32.totalorder %s3107_s29, 0 }
  0x83   : > { %s2737_s7 = sshll.u32 %s449_s2, 4  ;;  %s450_s11 = scalar_lea.sflag [#allocation7], %s449_s2 }
  0x84   : > { %2354 = dma.done.wait (%p3130_p2), %s450_s11, 256  }
  0x85   : > { %2356 = vsyncadd (%p3130_p2), %s450_s11, 4294967040  ;;  %s3077_s12 = sand.u32 1, %s2371_s14   ;;  %p530_p12 = scmp.lt.s32.totalorder %s2407_s23, 1 }
  0x86   : > { %s2747_s10 = sshll.u32 %s3077_s12, 3  ;;  %p535_p7 = scmp.lt.s32.totalorder %s2403_s22, 1 }
  0x87   : > { %s531_s30 = scalar_select %p530_p12, %s2407_s23, 1 }
  0x88   : > { %s536_s28 = scalar_select %p535_p7, %s2403_s22, 1 }
  0x89   : > { %s1834_s16 = sshll.u32 %s531_s30, 4  ;;  %s3131_s1 = sld [smem:[#allocation35_spill]] }
  0x8a   : > { %s1835_s3 = sshll.u32 %s536_s28, 4  ;;  %s3132_s11 = sld [smem:[#allocation36_spill]] }
  0x8b   : > { %s3133_s12 = sld [smem:[#allocation37_spill]]  ;;  %s3134_s0 = sld [smem:[#allocation38_spill]] }
  0x8c   : > { %s1838_s30 = sshll.u32 %s536_s28, 5  ;;  %s3135_s8 = sld [smem:[#allocation40_spill]] }
  0x8d   : > { %s3136_s15 = sld [smem:[#allocation41_spill]]  ;;  %s2779_s2 = scalar_lea.vmem [#allocation8], %s1781_s26 }
  0x8e   : > { %s529_s5 = scalar_lea.vmem [#allocation9], %s2747_s10  ;;  %p1797_p5 = scmp.ne.s32.totalorder %s2403_s22, 0 }
  0x8f   : > { %s2756_s29 = scalar_lea.vmem %s3131_s1, %s1834_s16  ;;  %v565_v0 = vld [vmem:[%s444_s6] sm:$0xff] (!%p1797_p5)  ;;  %vm566_vm0 = vcmask (!%p1797_p5), 261120  }
  0x90   : > { %s539_s13 = scalar_lea.vmem %s3132_s11, %s1835_s3  ;;  %564 = sbr.rel (%p1797_p5) target bundleno = 151 (0x97), region = 68  ;;  %567 = vst.msk [vmem:[#allocation2] sm:$0xff] (!%p1797_p5), %vm566_vm0, %v565_v0 }
  0x91   : > { %s544_s9 = scalar_lea.vmem %s3133_s12, %s1835_s3  ;;  %s2767_s18 = scalar_lea.vmem %s3134_s0, %s1835_s3 }
  0x92   : > { %s2772_s16 = scalar_lea.vmem %s3135_s8, %s1838_s30 }
  0x93   : > { %s2777_s27 = scalar_lea.vmem %s3136_s15, %s1835_s3 }
  0x97 PF: > { %v2143_v1 = vld [vmem:[%s539_s13] sm:$0xff]   ;;  %v2425_v2 = vmov 0.0   ;;  %v2144_v3 = vld [vmem:[%s539_s13 + $0x8] sm:$0xff]   ;;  %vm2426_vm1 = vmmov 0   ;;  %vm595_vm2 = vcmask 261120   ;;  %v579_v11 = vlaneseq  ;;  %s2427_s0 = smov 120  }
  0x98   : > { %1873 = vmatprep.subr.bf16.mxu1 %v2425_v2  ;;  %1889 = vmatprep.subr.bf16.mxu0 %v2425_v2  ;;  %v2787_v4 = vld [vmem:[#allocation2] sm:$0xff]  ;;  %v2146_v7 = vld [vmem:[%s544_s9 + $0x8] sm:$0xff]   ;;  %vm777_vm3 = vcmask 64512   ;;  %s2428_s1 = smov 104   ;;  %s2429_s15 = smov 112   ;;  %vm966_vm4 = vcmask 130048  }
  0x99   : > { %1874 = vmatpush3.bf16.msra.mxu1 %v2143_v1  ;;  %1877 = vmatprep.mubr.msk.bf16.mxu1 %vm2426_vm1, %v2425_v2  ;;  %v573_v5 = vpack.c.bf16 %v2787_v4, %v2787_v4  ;;  %v2145_v6 = vld [vmem:[%s544_s9] sm:$0xff]   ;;  %v570_v9 = vld [vmem:[%s2756_s29 + $0x8] sm:$0xff]  ;;  %v2805_v12 = vshrl.u32 %v579_v11, 7  ;;  %s2430_s17 = smov 32   ;;  %s2431_s20 = smov 96   ;;  %vm1235_vm5 = vcmask 195584  }
  0x9a   : > { %1875 = vmatprep.subr.bf16.mxu1 %v2425_v2  ;;  %1891 = vmatprep.mubr.msk.bf16.mxu0 %vm2426_vm1, %v2425_v2  ;;  %v569_v8 = vld [vmem:[%s2756_s29] sm:$0xff]  ;;  %s2432_s21 = smov 8   ;;  %s2433_s24 = smov 16   ;;  %vm1428_vm6 = vcmask 523264  }
  0x9b   : > { %v574_v10 = vpack.c.bf16 %v570_v9, %v569_v8  ;;  %v581_v13 = vsub.s32 0, %v2805_v12  ;;  %v2809_v14 = vld [vmem:[%s2777_s27] sm:$0xff]  ;;  %v701_v21 = vsub.s32 1, %v2805_v12  ;;  %v707_v32 = vsub.s32 2, %v2805_v12  ;;  %s2434_s9 = smov 24   ;;  %p1823_p0 = scmp.ne.s32.totalorder %s2403_s22, 1 }
  0x9d   : > { %1876 = vmatpush3.bf16.msra.mxu1 %v2144_v3  ;;  %v582_v15 = vrot.slane %v2809_v14, %v581_v13  ;;  %v702_v22 = vrot.slane %v2809_v14, %v701_v21  ;;  %v708_v34 = vrot.slane %v2809_v14, %v707_v32 }
  0x9e   : > { %1881 = vmatprep.subr.bf16.mxu1 %v2425_v2 }
  0xa0   : > { %1878 = vmatmul.mubr.msk.bf16.vlgmr.msra.gmra.mrb[0].mxu1 %vm595_vm2, %v573_v5 }
  0xa1   : > { %1882 = vmatpush3.bf16.msra.mxu1 %v2145_v6  ;;  %1885 = vmatprep.mubr.msk.bf16.mxu1 %vm2426_vm1, %v2425_v2 }
  0xa2   : > { %1883 = vmatprep.subr.bf16.mxu1 %v2425_v2 }
  0xa5   : > { %1884 = vmatpush3.bf16.msra.mxu1 %v2146_v7 }
  0xa6   : > { %1895 = vmatprep.subr.bf16.mxu1 %v2425_v2 }
  0xa8   : > { %1886 = vmatmul.mubr.msk.bf16.vlgmr.msra.gmra.mrb[4].mxu1 %vm595_vm2, %v574_v10 }
  0xa9   : > { %1897 = vmatprep.mubr.msk.bf16.mxu1 %vm2426_vm1, %v2425_v2 }
 0x173   : > { %v633_v16 = vpop.f32.mrb[0].mxu1 }
 0x174   : > { %v634_v17 = vadd.f32 %v633_v16, %v582_v15  ;;  %v1879_v18 = vpop.f32.mrb[1].mxu1 }
 0x175   : > { %v636_v19 = vpop.f32.mrb[2].mxu1 }
 0x176   : > { %716 = vrot.lane.b32.xlu1 %v634_v17, %s2427_s0  ;;  %v1880_v20 = vpop.f32.mrb[3].mxu1  ;;  %v725_v33 = vpack.c.bf16 %v634_v17, %v634_v17 }
 0x17b   : > { %v692_v23 = vpop.f32.mrb[4].mxu1 }
 0x17c   : > { %v1887_v24 = vpop.f32.mrb[5].mxu1  ;;  %v703_v26 = vadd.f32 %v702_v22, %v692_v23 }
 0x17d   : > { %v695_v25 = vpop.f32.mrb[6].mxu1 }
 0x17e   : > { %v704_v27 = vadd.f32 %v702_v22, %v695_v25  ;;  %v1888_v28 = vpop.f32.mrb[7].mxu1 }
 0x180   : > { %v2123_v29 = vpack.i.bf16 %v704_v27, %v703_v26  ;;  %v749_v30 = vpack.c.bf16 %v704_v27, %v703_v26 }
 0x182   : > { %2124 = vrot.lane.b32.xlu1 %v2123_v29, %s2428_s1  ;;  %2114 = vrot.lane.b32.xlu0 %v2123_v29, %s2427_s0  ;;  %v782_v31 = vsel %vm777_vm3, %v749_v30, 0 }
 0x183   : > { %1890 = vmatpush3.bf16.xpose.msra.mxu0 %v782_v31 }
 0x184   : > { %1901 = vmatprep.subr.bf16.mxu0 %v2425_v2 }
 0x186   : > { %722 = vrot.lane.b32.xlu1 %v634_v17, %s2428_s1  ;;  %2119 = vrot.lane.b32.xlu0 %v2123_v29, %s2429_s15 }
 0x18a   : > { %719 = vrot.lane.b32.xlu0 %v634_v17, %s2429_s15  ;;  %1892 = vmatmul.mubr.msk.bf16.vlgmr.msra.gmra.mrb[0].mxu0 %vm777_vm3, %v725_v33 }
 0x18b   : > { %1903 = vmatprep.mubr.msk.bf16.mxu0 %vm2426_vm1, %v2425_v2 }
 0x18e   : > { %710 = vrot.lane.b32.xlu0 %v708_v34, %s2430_s17 }
 0x1e8   : > { %v717_v35 = vpop.permute.xlu1 %716 }
 0x1e9   : > { %v726_v51 = vpack.c.bf16 %v717_v35, %v717_v35 }
 0x1f4   : > { %v2115_v36 = vpop.permute.xlu0 %2114  ;;  %v2125_v37 = vpop.permute.xlu1 %2124 }
 0x1f5   : > { %v2117_v38 = vunpack.i.h.bf16 %v2115_v36  ;;  %v2116_v39 = vunpack.i.l.bf16 %v2115_v36  ;;  %v2127_v41 = vunpack.i.h.bf16 %v2125_v37  ;;  %v2126_v43 = vunpack.i.l.bf16 %v2125_v37 }
 0x1f7   : > { %v750_v40 = vpack.c.bf16 %v2117_v38, %v2116_v39  ;;  %v752_v49 = vpack.c.bf16 %v2127_v41, %v2126_v43 }
 0x1f8   : > { %v2120_v42 = vpop.permute.xlu0 %2119  ;;  %v723_v59 = vpop.permute.xlu1 %722 }
 0x1f9   : > { %v2122_v44 = vunpack.i.h.bf16 %v2120_v42  ;;  %v2121_v45 = vunpack.i.l.bf16 %v2120_v42  ;;  %v828_v46 = vsel %vm777_vm3, %v750_v40, 0  ;;  %v920_v55 = vsel %vm777_vm3, %v752_v49, 0 }
 0x1fa   : > { %1896 = vmatpush3.bf16.xpose.msra.mxu1 %v828_v46  ;;  %v728_v60 = vpack.c.bf16 %v723_v59, %v723_v59 }
 0x1fb   : > { %v751_v47 = vpack.c.bf16 %v2122_v44, %v2121_v45  ;;  %1907 = vmatprep.subr.bf16.mxu1 %v2425_v2 }
 0x1fc   : > { %v720_v48 = vpop.permute.xlu0 %719 }
 0x1fd   : > { %v874_v50 = vsel %vm777_vm3, %v751_v47, 0  ;;  %v727_v56 = vpack.c.bf16 %v720_v48, %v720_v48 }
 0x1fe   : > { %1902 = vmatpush3.bf16.xpose.msra.mxu0 %v874_v50 }
 0x1ff   : > { %1913 = vmatprep.subr.bf16.mxu0 %v2425_v2 }
 0x200   : > { %v711_v52 = vpop.permute.xlu0 %710 }
 0x201   : > { %v713_v53 = vadd.f32 %v711_v52, %v692_v23  ;;  %v714_v54 = vadd.f32 %v711_v52, %v695_v25  ;;  %1898 = vmatmul.mubr.msk.bf16.vlgmr.msra.gmra.mrb[8].mxu1 %vm777_vm3, %v726_v51 }
 0x202   : > { %1908 = vmatpush3.bf16.xpose.msra.mxu1 %v920_v55  ;;  %1909 = vmatprep.mubr.msk.bf16.mxu1 %vm2426_vm1, %v2425_v2 }
 0x203   : > { %v2133_v57 = vpack.i.bf16 %v714_v54, %v713_v53  ;;  %v773_v58 = vpack.c.bf16 %v714_v54, %v713_v53  ;;  %1919 = vmatprep.subr.bf16.mxu1 %v2425_v2 }
 0x205   : > { %1904 = vmatmul.mubr.msk.bf16.vlgmr.msra.gmra.mrb[4].mxu0 %vm777_vm3, %v727_v56 }
 0x206   : > { %1915 = vmatprep.mubr.msk.bf16.mxu0 %vm2426_vm1, %v2425_v2 }
 0x209   : > { %1910 = vmatmul.mubr.msk.bf16.vlgmr.msra.gmra.mrb[12].mxu1 %vm777_vm3, %v728_v60 }
 0x20a   : > { %1921 = vmatprep.mubr.msk.bf16.mxu1 %vm2426_vm1, %v2425_v2 }
 0x25d   : > { %v818_v61 = vpop.f32.mrb[0].mxu0 }
 0x25e   : > { %v962_v62 = vmul.f32 0.35355338, %v818_v61  ;;  %v1893_v63 = vpop.f32.mrb[1].mxu0 }
 0x25f   : > { %v821_v0 = vpop.f32.mrb[2].mxu0 }
 0x260   : > { %v1894_v1 = vpop.f32.mrb[3].mxu0  ;;  %v967_v3 = vsel %vm966_vm4, %v962_v62, -inf }
 0x261   : > { %968 = vmax.xlane.f32.xlu1 %v967_v3 }
 0x2d4   : > { %v864_v5 = vpop.f32.mrb[8].mxu1 }
 0x2d5   : > { %v963_v6 = vmul.f32 0.35355338, %v864_v5  ;;  %v1899_v7 = vpop.f32.mrb[9].mxu1 }
 0x2d6   : > { %v867_v8 = vpop.f32.mrb[10].mxu1 }
 0x2d7   : > { %v1900_v9 = vpop.f32.mrb[11].mxu1  ;;  %v970_v10 = vsel %vm966_vm4, %v963_v6, -inf }
 0x2d8   : > { %v910_v11 = vpop.f32.mrb[4].mxu0  ;;  %971 = vmax.xlane.f32.xlu0 %v970_v10 }
 0x2d9   : > { %v964_v15 = vmul.f32 0.35355338, %v910_v11  ;;  %v1905_v16 = vpop.f32.mrb[5].mxu0 }
 0x2da   : > { %v913_v17 = vpop.f32.mrb[6].mxu0 }
 0x2db   : > { %v1906_v18 = vpop.f32.mrb[7].mxu0  ;;  %v973_v19 = vsel %vm966_vm4, %v964_v15, -inf }
 0x2dc   : > { %974 = vmax.xlane.f32.xlu0 %v973_v19  ;;  %v956_v20 = vpop.f32.mrb[12].mxu1 }
 0x2dd   : > { %v965_v22 = vmul.f32 0.35355338, %v956_v20  ;;  %v1911_v23 = vpop.f32.mrb[13].mxu1 }
 0x2de   : > { %v959_v24 = vpop.f32.mrb[14].mxu1 }
 0x2df   : > { %v1912_v25 = vpop.f32.mrb[15].mxu1  ;;  %v976_v26 = vsel %vm966_vm4, %v965_v22, -inf }
 0x2e0   : > { %977 = vmax.xlane.f32.xlu1 %v976_v26 }
 0x2ee   : > { %v969_v27 = vpop.xlane.xlu1 %968 }
 0x2ef   : > { %v979_v28 = vsub.f32 %v962_v62, %v969_v27 }
 0x2f1   : > { %2134 = vrot.lane.b32.xlu1 %v2133_v57, %s2429_s15  ;;  %v983_v29 = vmul.f32 1.442695, %v979_v28 }
 0x2f2   : > { %2129 = vrot.lane.b32.xlu0 %v2133_v57, %s2427_s0 }
 0x2f3   : > { %2155 = vpow2.f32 %v983_v29 }
 0x2f5   : > { %2139 = vrot.lane.b32.xlu1 %v2133_v57, %s2428_s1 }
 0x2f9   : > { %1016 = vrot.lane.b32.xlu1 %v773_v58, %s2431_s20 }
 0x2fd   : > { %v2156_v30 = vpop.eup %2155 }
 0x2fe   : > { %v991_v31 = vsel %vm966_vm4, %v2156_v30, 0.0 }
 0x311   : > { %992 = vadd.xlane.f32.xlu0 %v991_v31 }
 0x365   : > { %v972_v32 = vpop.xlane.xlu0 %971 }
 0x366   : > { %v980_v33 = vsub.f32 %v963_v6, %v972_v32 }
 0x368   : > { %v985_v34 = vmul.f32 1.442695, %v980_v33  ;;  %v2147_v33 = vld [vmem:[%s2767_s18] sm:$0xff]  }
 0x369   : > { %v975_v35 = vpop.xlane.xlu0 %974 }
 0x36a   : > { %2157 = vpow2.f32 %v985_v34  ;;  %v981_v36 = vsub.f32 %v964_v15, %v975_v35  ;;  %v2148_v34 = vld [vmem:[%s2767_s18 + $0x8] sm:$0xff]   ;;  %s3137_s18 = scalar_lea.vmem [#allocation6], %s2737_s7  ;;  %s3139_s7 = sld [smem:[#allocation42_spill]] (!%p1823_p0) }
 0x36b   : > { %s3138_s19 = smov %s3137_s18 }
 0x36c   : > { %v987_v37 = vmul.f32 1.442695, %v981_v36 }
 0x36d   : > { %v978_v38 = vpop.xlane.xlu1 %977  ;;  %v2130_v56 = vpop.permute.xlu0 %2129 }
 0x36e   : > { %2159 = vpow2.f32 %v987_v37  ;;  %v982_v39 = vsub.f32 %v965_v22, %v978_v38  ;;  %v2132_v57 = vunpack.i.h.bf16 %v2130_v56  ;;  %v2131_v58 = vunpack.i.l.bf16 %v2130_v56 }
 0x370   : > { %v989_v40 = vmul.f32 1.442695, %v982_v39  ;;  %v774_v59 = vpack.c.bf16 %v2132_v57, %v2131_v58 }
 0x371   : > { %v2135_v41 = vpop.permute.xlu1 %2134 }
 0x372   : > { %2161 = vpow2.f32 %v989_v40  ;;  %v2137_v50 = vunpack.i.h.bf16 %v2135_v41  ;;  %v2136_v51 = vunpack.i.l.bf16 %v2135_v41 }
 0x374   : > { %v2158_v42 = vpop.eup %2157  ;;  %v775_v52 = vpack.c.bf16 %v2137_v50, %v2136_v51 }
 0x375   : > { %v2140_v43 = vpop.permute.xlu1 %2139  ;;  %v994_v44 = vsel %vm966_vm4, %v2158_v42, 0.0 }
 0x376   : > { %995 = vadd.xlane.f32.xlu1 %v994_v44  ;;  %v2142_v53 = vunpack.i.h.bf16 %v2140_v43  ;;  %v2141_v54 = vunpack.i.l.bf16 %v2140_v43 }
 0x378   : > { %v2160_v45 = vpop.eup %2159  ;;  %v776_v55 = vpack.c.bf16 %v2142_v53, %v2141_v54  ;;  %v1244_v54 = vsub.s32 3, %v2805_v12 }
 0x379   : > { %v1017_v46 = vpop.permute.xlu1 %1016  ;;  %v997_v47 = vsel %vm966_vm4, %v2160_v45, 0.0 }
 0x37a   : > { %998 = vadd.xlane.f32.xlu0 %v997_v47  ;;  %1914 = vmatpush3.bf16.msra.mxu0 %v1017_v46 }
 0x37b   : > { %1925 = vmatprep.subr.bf16.mxu0 %v2425_v2 }
 0x37c   : > { %v2162_v48 = vpop.eup %2161 }
 0x37d   : > { %v1000_v49 = vsel %vm966_vm4, %v2162_v48, 0.0 }
 0x37e   : > { %1001 = vadd.xlane.f32.xlu0 %v1000_v49 }
 0x387   : > { %1110 = vrot.lane.b32.xlu1 %v775_v52, %s2431_s20 }
 0x38b   : > { %1157 = vrot.lane.b32.xlu1 %v776_v55, %s2431_s20  ;;  %v1245_v55 = vrot.slane %v2809_v14, %v1244_v54 }
 0x394   : > { %1063 = vrot.lane.b32.xlu0 %v774_v59, %s2431_s20 }
 0x39e   : > { %v993_v60 = vpop.xlane.xlu0 %992 }
 0x39f   : > { %2163 = vrcp.f32 %v993_v60 }
 0x3a9   : > { %v2164_v61 = vpop.eup %2163 }
 0x3aa   : > { %v1007_v62 = vmul.f32 %v2164_v61, %v2156_v30 }
 0x3ac   : > { %v1011_v63 = vpack.c.bf16 %v1007_v62, %v1007_v62  ;;  %v1211_v17 = vsel %vm966_vm4, %v1007_v62, 0.0 }
 0x3ae   : > { %1916 = vmatmul.mubr.msk.bf16.vlgmr.msra.gmra.mrb[8].mxu0 %vm966_vm4, %v1011_v63 }
 0x3af   : > { %1927 = vmatprep.mubr.msk.bf16.mxu0 %vm2426_vm1, %v2425_v2 }
 0x403   : > { %v996_v0 = vpop.xlane.xlu1 %995 }
 0x404   : > { %2165 = vrcp.f32 %v996_v0 }
 0x407   : > { %v999_v1 = vpop.xlane.xlu0 %998  ;;  %v1111_v3 = vpop.permute.xlu1 %1110 }
 0x408   : > { %2167 = vrcp.f32 %v999_v1  ;;  %1926 = vmatpush3.bf16.msra.mxu0 %v1111_v3 }
 0x409   : > { %1937 = vmatprep.subr.bf16.mxu0 %v2425_v2 }
 0x40b   : > { %v1002_v5 = vpop.xlane.xlu0 %1001  ;;  %v1158_v16 = vpop.permute.xlu1 %1157 }
 0x40c   : > { %2169 = vrcp.f32 %v1002_v5 }
 0x40e   : > { %v2166_v6 = vpop.eup %2165 }
 0x40f   : > { %v1008_v7 = vmul.f32 %v2166_v6, %v2158_v42  ;;  %v1064_v8 = vpop.permute.xlu0 %1063  ;;  %v2149_v6 = vld [vmem:[%s3137_s18] sm:$0xff]  }
 0x410   : > { %1920 = vmatpush3.bf16.msra.mxu1 %v1064_v8  ;;  %v2152_v8 = vld [vmem:[%s2772_s16 + $0x8] sm:$0xff]  }
 0x411   : > { %v1012_v9 = vpack.c.bf16 %v1008_v7, %v1008_v7  ;;  %1931 = vmatprep.subr.bf16.mxu1 %v2425_v2  ;;  %v1212_v11 = vsel %vm966_vm4, %v1008_v7, 0.0  ;;  %v2150_v7 = vld [vmem:[%s3138_s19 + $0x8] sm:$0xff]  }
 0x412   : > { %v2168_v10 = vpop.eup %2167  ;;  %v1213_v22 = vadd.f32 %v1212_v11, %v1211_v17 }
 0x413   : > { %v1009_v15 = vmul.f32 %v2168_v10, %v2160_v45  ;;  %1922 = vmatmul.mubr.msk.bf16.vlgmr.msra.gmra.mrb[16].mxu1 %vm966_vm4, %v1012_v9 }
 0x414   : > { %1932 = vmatpush3.bf16.msra.mxu1 %v1158_v16  ;;  %1933 = vmatprep.mubr.msk.bf16.mxu1 %vm2426_vm1, %v2425_v2  ;;  %v1323_v16 = vsub.s32 5, %v2805_v12 }
 0x415   : > { %v1214_v18 = vsel %vm966_vm4, %v1009_v15, 0.0  ;;  %v1013_v19 = vpack.c.bf16 %v1009_v15, %v1009_v15  ;;  %1945 = vmatprep.subr.bf16.mxu1 %v2425_v2  ;;  %v1318_v15 = vsub.s32 4, %v2805_v12 }
 0x416   : > { %v2170_v20 = vpop.eup %2169  ;;  %v1215_v24 = vadd.f32 %v1214_v18, %v1213_v22 }
 0x417   : > { %v1010_v23 = vmul.f32 %v2170_v20, %v2162_v48  ;;  %1928 = vmatmul.mubr.msk.bf16.vlgmr.msra.gmra.mrb[12].mxu0 %vm966_vm4, %v1013_v19  ;;  %v1319_v17 = vrot.slane %v2809_v14, %v1318_v15  ;;  %v1324_v20 = vrot.slane %v2809_v14, %v1323_v16 }
 0x418   : > { %1941 = vmatprep.mubr.msk.bf16.mxu0 %vm2426_vm1, %v2425_v2  ;;  %1938 = vmatpush3.bf16.msra.mxu0 %v2147_v33 }
 0x419   : > { %v1216_v25 = vsel %vm966_vm4, %v1010_v23, 0.0  ;;  %v1014_v26 = vpack.c.bf16 %v1010_v23, %v1010_v23  ;;  %1939 = vmatprep.subr.bf16.mxu0 %v2425_v2 }
 0x41a   : > { %v1217_v27 = vadd.f32 %v1216_v25, %v1215_v24  ;;  %v2153_v25 = vld [vmem:[%s2772_s16 + $0x10] sm:$0xff]  }
 0x41b   : > { %1934 = vmatmul.mubr.msk.bf16.vlgmr.msra.gmra.mrb[20].mxu1 %vm966_vm4, %v1014_v26  ;;  %v2154_v26 = vld [vmem:[%s2772_s16 + $0x18] sm:$0xff]  }
 0x41c   : > { %v1219_v28 = vmul.f32 0.25, %v1217_v27  ;;  %1949 = vmatprep.mubr.msk.bf16.mxu1 %vm2426_vm1, %v2425_v2  ;;  %1940 = vmatpush3.bf16.msra.mxu0 %v2148_v34  ;;  %v572_v27 = vld [vmem:[%s2777_s27 + $0x8] sm:$0x3] }
 0x41d   : > { %1953 = vmatprep.subr.bf16.mxu0 %v2425_v2  ;;  %1946 = vmatpush3.bf16.msra.mxu1 %v2149_v6  ;;  %v1494_v54 = vrot.slane %v572_v27, %v581_v13 }
 0x41e   : > { %1220 = vst.msk [vmem:[%s529_s5] sm:$0xff] %vm966_vm4, %v1219_v28  ;;  %1947 = vmatprep.subr.bf16.mxu1 %v2425_v2  ;;  %v1334_v28 = vrot.slane %v572_v27, %v701_v21 }
 0x421   : > { %1948 = vmatpush3.bf16.msra.mxu1 %v2150_v7 }
 0x481   : > { %v1056_v29 = vpop.f32.mrb[8].mxu0 }
 0x482   : > { %v1917_v30 = vpop.f32.mrb[9].mxu0 }
 0x483   : > { %v1059_v31 = vpop.f32.mrb[10].mxu0 }
 0x484   : > { %v1918_v32 = vpop.f32.mrb[11].mxu0 }
 0x4e6   : > { %v1103_v35 = vpop.f32.mrb[16].mxu1 }
 0x4e7   : > { %1222 = vrot.lane.b32.xlu0 %v1103_v35, %s2432_s21  ;;  %v1923_v36 = vpop.f32.mrb[17].mxu1 }
 0x4e8   : > { %v1106_v37 = vpop.f32.mrb[18].mxu1  ;;  %v1402_v36 = vsub.s32 6, %v2805_v12 }
 0x4e9   : > { %v1924_v38 = vpop.f32.mrb[19].mxu1 }
 0x4ea   : > { %v1150_v39 = vpop.f32.mrb[12].mxu0  ;;  %v1403_v37 = vrot.slane %v2809_v14, %v1402_v36 }
 0x4eb   : > { %1226 = vrot.lane.b32.xlu1 %v1150_v39, %s2433_s24  ;;  %v1929_v40 = vpop.f32.mrb[13].mxu0 }
 0x4ec   : > { %v1153_v41 = vpop.f32.mrb[14].mxu0 }
 0x4ed   : > { %v1930_v42 = vpop.f32.mrb[15].mxu0 }
 0x4ee   : > { %v1197_v43 = vpop.f32.mrb[20].mxu1 }
 0x4ef   : > { %1230 = vrot.lane.b32.xlu0 %v1197_v43, %s2434_s9  ;;  %v1935_v44 = vpop.f32.mrb[21].mxu1 }
 0x4f0   : > { %v1200_v45 = vpop.f32.mrb[22].mxu1 }
 0x4f1   : > { %v1936_v46 = vpop.f32.mrb[23].mxu1 }
 0x559   : > { %v1223_v47 = vpop.permute.xlu0 %1222 }
 0x55a   : > { %v1233_v49 = vsel %vm777_vm3, %v1056_v29, %v1223_v47 }
 0x55d   : > { %v1227_v48 = vpop.permute.xlu1 %1226 }
 0x55e   : > { %v1234_v50 = vsel %vm966_vm4, %v1233_v49, %v1227_v48 }
 0x561   : > { %v1231_v51 = vpop.permute.xlu0 %1230 }
 0x562   : > { %v1236_v52 = vsel %vm1235_vm5, %v1234_v50, %v1231_v51  ;;  %v1488_v51 = vsub.s32 7, %v2805_v12 }
 0x563   : > { %v1237_v53 = vpack.c.bf16 %v1236_v52, %v1236_v52 }
 0x564   : > { %v1489_v52 = vrot.slane %v2809_v14, %v1488_v51 }
 0x565   : > { %1942 = vmatmul.mubr.msk.bf16.vlgmr.msra.gmra.mrb[16].mxu0 %vm595_vm2, %v1237_v53 }
 0x566   : > { %1961 = vmatprep.mubr.msk.bf16.mxu0 %vm2426_vm1, %v2425_v2 }
 0x638   : > { %v1295_v56 = vpop.f32.mrb[16].mxu0 }
 0x639   : > { %v1296_v57 = vadd.f32 %v1295_v56, %v1245_v55  ;;  %v1943_v58 = vpop.f32.mrb[17].mxu0 }
 0x63a   : > { %v1298_v59 = vpop.f32.mrb[18].mxu0 }
 0x63b   : > { %v1944_v60 = vpop.f32.mrb[19].mxu0  ;;  %v1301_v61 = vadd.f32 %v1296_v57, %v2787_v4  ;;  %v2151_v4 = vld [vmem:[%s2772_s16] sm:$0xff]  }
 0x63c   : > { %1954 = vmatpush3.bf16.msra.mxu0 %v2151_v4 }
 0x63d   : > { %v1302_v62 = vsel %vm595_vm2, %v1301_v61, 0.0  ;;  %1955 = vmatprep.subr.bf16.mxu0 %v2425_v2 }
 0x63e   : > { %1303 = vadd.xlane.f32.xlu1 %v1302_v62 }
 0x640   : > { %1956 = vmatpush3.bf16.msra.mxu0 %v2152_v8 }
 0x641   : > { %1957 = vmatprep.subr.bf16.mxu0 %v2425_v2 }
 0x644   : > { %1958 = vmatpush3.bf16.msra.mxu0 %v2153_v25 }
 0x645   : > { %1959 = vmatprep.subr.bf16.mxu0 %v2425_v2 }
 0x648   : > { %1960 = vmatpush3.bf16.msra.mxu0 %v2154_v26 }
 0x6cb   : > { %v1304_v63 = vpop.xlane.xlu1 %1303 }
 0x6cc   : > { %v1306_v0 = vmul.f32 0.03125, %v1304_v63 }
 0x6ce   : > { %v1307_v1 = vsub.f32 %v1301_v61, %v1306_v0 }
 0x6d0   : > { %v1308_v3 = vmul.f32 %v1307_v1, %v1307_v1 }
 0x6d2   : > { %v1309_v5 = vsel %vm595_vm2, %v1308_v3, 0.0 }
 0x6d3   : > { %1310 = vadd.xlane.f32.xlu0 %v1309_v5  ;;  %v1825_v5 = vld [vmem:[%s3139_s7 + $0x1] ss:$0 sm:$0xff] (!%p1823_p0) }
 0x760   : > { %v1311_v9 = vpop.xlane.xlu0 %1310 }
 0x761   : > { %v1312_v10 = vmul.f32 0.03125, %v1311_v9 }
 0x763   : > { %v1313_v11 = vadd.f32 1e-06, %v1312_v10 }
 0x765   : > { %2171 = vrsqrt.f32 %v1313_v11 }
 0x76f   : > { %v2172_v18 = vpop.eup %2171 }
 0x770   : > { %v1315_v19 = vmul.f32 %v2172_v18, %v1307_v1  ;;  %v1824_v1 = vld [vmem:[%s3139_s7] ss:$0 sm:$0xff] (!%p1823_p0) }
 0x772   : > { %v1320_v22 = vmul.f32 %v1319_v17, %v1315_v19 }
 0x774   : > { %v1325_v23 = vadd.f32 %v1324_v20, %v1320_v22 }
 0x776   : > { %v1326_v24 = vpack.c.bf16 %v1325_v23, %v1325_v23 }
 0x778   : > { %1950 = vmatmul.mubr.msk.bf16.vlgmr.msra.gmra.mrb[24].mxu1 %vm595_vm2, %v1326_v24 }
 0x84b   : > { %v1384_v29 = vpop.f32.mrb[24].mxu1 }
 0x84c   : > { %v1385_v30 = vadd.f32 %v1384_v29, %v1334_v28  ;;  %v1951_v31 = vpop.f32.mrb[25].mxu1 }
 0x84d   : > { %v1387_v32 = vpop.f32.mrb[26].mxu1 }
 0x84e   : > { %v1390_v33 = vmax.f32 %v1385_v30, 0.0  ;;  %v1952_v34 = vpop.f32.mrb[27].mxu1 }
 0x850   : > { %v1391_v35 = vpack.c.bf16 %v1390_v33, %v1390_v33 }
 0x852   : > { %1962 = vmatmul.mubr.msk.bf16.vlgmr.msra.gmra.mrb[20].mxu0 %vm1428_vm6, %v1391_v35 }
 0x925   : > { %v1466_v2 = vpop.f32.mrb[20].mxu0 }
 0x926   : > { %v1467_v38 = vadd.f32 %v1466_v2, %v1403_v37  ;;  %v1963_v39 = vpop.f32.mrb[21].mxu0 }
 0x927   : > { %v1469_v40 = vpop.f32.mrb[22].mxu0 }
 0x928   : > { %v1964_v41 = vpop.f32.mrb[23].mxu0  ;;  %v1472_v42 = vadd.f32 %v1467_v38, %v1325_v23 }
 0x92a   : > { %v1473_v21 = vsel %vm595_vm2, %v1472_v42, 0.0 }
 0x92b   : > { %1474 = vadd.xlane.f32.xlu0 %v1473_v21 }
 0x9b8   : > { %v1475_v43 = vpop.xlane.xlu0 %1474 }
 0x9b9   : > { %v1476_v44 = vmul.f32 0.03125, %v1475_v43 }
 0x9bb   : > { %v1477_v45 = vsub.f32 %v1472_v42, %v1476_v44 }
 0x9bd   : > { %v1478_v46 = vmul.f32 %v1477_v45, %v1477_v45 }
 0x9bf   : > { %v1479_v47 = vsel %vm595_vm2, %v1478_v46, 0.0 }
 0x9c0   : > { %1480 = vadd.xlane.f32.xlu1 %v1479_v47 }
 0xa4d   : > { %v1481_v48 = vpop.xlane.xlu1 %1480 }
 0xa4e   : > { %v1482_v49 = vmul.f32 0.03125, %v1481_v48 }
 0xa50   : > { %v1483_v50 = vadd.f32 1e-06, %v1482_v49 }
 0xa52   : > { %2173 = vrsqrt.f32 %v1483_v50 }
 0xa5c   : > { %v2174_v53 = vpop.eup %2173 }
 0xa5d   : > { %v1485_v55 = vmul.f32 %v2174_v53, %v1477_v45  ;;  %1500 = sbr.rel (%p1823_p0) target bundleno = 2973 (0xb9d), region = 72 }
 0xa5f   : > { %v1490_v56 = vmul.f32 %v1489_v52, %v1485_v55 }
 0xa61   : > { %v1495_v57 = vadd.f32 %v1494_v54, %v1490_v56 }
 0xa63   : > { %1496 = vst.msk [vmem:[#allocation2] sm:$0xff] %vm595_vm2, %v1495_v57  ;;  %v1503_v58 = vsel (!%p1823_p0), %vm595_vm2, %v1495_v57, 0.0 }
 0xa64   : > { %1504 = vadd.xlane.f32.xlu0 %v1503_v58 }
 0xaf1   : > { %v1505_v59 = vpop.xlane.xlu0 %1504 }
 0xaf2   : > { %v1506_v60 = vmul.f32 0.03125, %v1505_v59 }
 0xaf4   : > { %v1507_v61 = vsub.f32 %v1495_v57, %v1506_v60 }
 0xaf6   : > { %v1508_v14 = vmul.f32 %v1507_v61, %v1507_v61 }
 0xaf8   : > { %v1509_v62 = vsel %vm595_vm2, %v1508_v14, 0.0 }
 0xaf9   : > { %1510 = vadd.xlane.f32.xlu0 %v1509_v62 }
 0xb86   : > { %v1511_v12 = vpop.xlane.xlu0 %1510 }
 0xb87   : > { %v1512_v13 = vmul.f32 0.03125, %v1511_v12 }
 0xb89   : > { %v1513_v63 = vadd.f32 1e-06, %v1512_v13 }
 0xb8b   : > { %2175 = vrsqrt.f32 %v1513_v63 }
 0xb95   : > { %v2176_v0 = vpop.eup %2175 }
 0xb96   : > { %v1515_v3 = vmul.f32 %v2176_v0, %v1507_v61 }
 0xb98   : > { %v1520_v6 = vmul.f32 %v1824_v1, %v1515_v3 }
 0xb9a   : > { %v1525_v7 = vadd.f32 %v1825_v5, %v1520_v6 }
 0xb9c   : > { %1526 = vst.msk [vmem:[%s2779_s2] sm:$0xff] %vm595_vm2, %v1525_v7 }
 0xb9d PF: > { %s3140_s28 = sld [smem:[#allocation25_spill]]  ;;  %s1828_s29 = sshll.u32 %s2407_s23, 7 }
 0xb9e   : > { %s3141_s30 = sld [smem:[#allocation43_spill]]  ;;  %s1546_s16 = sshll.u32 %s2779_s2, 4  ;;  %s1547_s16 = int_to_ptr.vmem [resolvable:$true] %s1546_s16 }
 0xb9f   : > { %s1528_s25 = scalar_lea.sflag [#allocation5], %s2728_s4  ;;  %s2237_s27 = scalar_lea.vmem %s1547_s16, 128 }
 0xba0   : > { %p2238_p9 = scmp.ne.s32.totalorder %s1547_s16, %s2237_s27  ;;  %s2435_s0 = smov [#allocation8]  }
 0xba1   : > { %s2241_s1 = sshll.u32 %s2435_s0, 4  ;;  %s2242_s1 = int_to_ptr.vmem [resolvable:$false] %s2241_s1 }
 0xba2   : > { %s2243_s15 = scalar_lea.vmem %s2242_s1, 256  ;;  %p2244_p8 = scmp.lt.s32.totalorder %s1547_s16, %s2242_s1 }
 0xba3   : > { %p3142_p13 = scmp.ne.s32.totalorder %s3140_s28, 0  ;;  %p2245_p3 = scmp.lt.s32.totalorder %s2243_s15, %s2237_s27 }
 0xba4   : > { %s2942_s8 = scalar_lea.hbm %s3141_s30, %s1828_s29 }
 0xba5   : > { %p2239_p1 = pnand %p2238_p9, %p3142_p13  ;;  %p2246_p6 = por %p2245_p3, %p2244_p8 }
 0xba7   : > { %p2240_p11 = pneg %p2239_p1 }
 0xba9   : > { %p2247_p10 = pnand %p2246_p6, %p2240_p11 }
 0xbab   : > { %2250 = shalt.err (!%p2247_p10)
}
 0xbac   : > { %s2251_s4 = scalar_lea.hbm %s2942_s8, 128  ;;  %s2255_s20 = scalar_lea.hbm %s3141_s30, 256 }
 0xbad   : > { %p2252_p4 = scmp.ne.s32.totalorder %s2942_s8, %s2251_s4  ;;  %p2256_p7 = scmp.lt.u32.totalorder %s2942_s8, %s3141_s30 }
 0xbae   : > { %p2257_p5 = scmp.lt.u32.totalorder %s2255_s20, %s2251_s4  ;;  %p2259_p9 = scmp.lt.u32.totalorder %s2251_s4, %s2942_s8 }
 0xbaf   : > { %p2253_p2 = pnand %p2252_p4, %p3142_p13 }
 0xbb0   : > { %p2258_p0 = por %p2257_p5, %p2256_p7 }
 0xbb1   : > { %p2254_p12 = pneg %p2253_p2 }
 0xbb2   : > { %p2260_p1 = por %p2259_p9, %p2258_p0 }
 0xbb4   : > { %p2261_p11 = pnand %p2260_p1, %p2254_p12 }
 0xbb6   : > { %2264 = shalt.err (!%p2261_p11)
}
 0xbb7   : > { %s3143_s9 = sld [smem:[#allocation27_spill]]  ;;  %s1829_s18 = sshll.u32 %s2403_s22, 1 }
 0xbb8   : > { %1969 = dma.vmem_to_hbm [thread:$0]  (%p3142_p13), %s1547_s16, 128, %s2942_s8, %s1528_s25  }
 0xbb9   : > { %s1561_s19 = sshll.u32 %s529_s5, 4  ;;  %s1557_s26 = sadd.s32 %s2407_s23, %s1829_s18  ;;  %s2967_s19 = int_to_ptr.vmem [resolvable:$true] %s1561_s19 }
 0xbba   : > { %s1830_s6 = sshll.u32 %s1557_s26, 7  ;;  %s3144_s28 = sld [smem:[#allocation44_spill]] }
 0xbbb   : > { %s3145_s3 = sand.u32 1, %s2371_s14   ;;  %s2265_s27 = scalar_lea.vmem %s2967_s19, 128 }
 0xbbc   : > { %s1533_s11 = scalar_lea.sflag [#allocation10], %s3145_s3  ;;  %p2266_p8 = scmp.ne.s32.totalorder %s2967_s19, %s2265_s27 }
 0xbbd   : > { %p3146_p3 = scmp.ne.s32.totalorder %s3143_s9, 0  ;;  %s2436_s22 = smov [#allocation9]  }
 0xbbe   : > { %s2269_s10 = sshll.u32 %s2436_s22, 4  ;;  %s2270_s10 = int_to_ptr.vmem [resolvable:$false] %s2269_s10 }
 0xbbf   : > { %p2267_p13 = pnand %p2266_p8, %p3146_p3  ;;  %s2271_s23 = scalar_lea.vmem %s2270_s10, 256 }
 0xbc0   : > { %s1559_s29 = scalar_lea.hbm %s3144_s28, %s1830_s6  ;;  %p2272_p10 = scmp.lt.s32.totalorder %s2967_s19, %s2270_s10 }
 0xbc1   : > { %p2268_p6 = pneg %p2267_p13  ;;  %p2273_p4 = scmp.lt.s32.totalorder %s2271_s23, %s2265_s27 }
 0xbc3   : > { %p2274_p2 = por %p2273_p4, %p2272_p10 }
 0xbc5   : > { %p2275_p12 = pnand %p2274_p2, %p2268_p6 }
 0xbc7   : > { %2278 = shalt.err (!%p2275_p12)
}
 0xbc8   : > { %s2279_s5 = scalar_lea.hbm %s1559_s29, 128  ;;  %s2283_s25 = scalar_lea.hbm %s3144_s28, 512 }
 0xbc9   : > { %p2280_p7 = scmp.ne.s32.totalorder %s1559_s29, %s2279_s5  ;;  %p2284_p9 = scmp.lt.u32.totalorder %s1559_s29, %s3144_s28 }
 0xbca   : > { %p2285_p1 = scmp.lt.u32.totalorder %s2283_s25, %s2279_s5  ;;  %p2287_p8 = scmp.lt.u32.totalorder %s2279_s5, %s1559_s29 }
 0xbcb   : > { %p2281_p5 = pnand %p2280_p7, %p3146_p3 }
 0xbcc   : > { %p2286_p11 = por %p2285_p1, %p2284_p9 }
 0xbcd   : > { %p2282_p0 = pneg %p2281_p5 }
 0xbce   : > { %p2288_p13 = por %p2287_p8, %p2286_p11 }
 0xbd0   : > { %p2289_p6 = pnand %p2288_p13, %p2282_p0 }
 0xbd2   : > { %2292 = shalt.err (!%p2289_p6)
}
 0xbd3   : > { %1970 = dma.vmem_to_hbm [thread:$0]  (%p3146_p3), %s2967_s19, 128, %s1559_s29, %s1533_s11  }
 0xbd4 PF: > { %s3147_s15 = sld [smem:[#allocation24_spill]]  ;;  %s3148_s4 = sld [smem:[#allocation19_spill]] }
 0xbd5   : > { %s3149_s2 = sld [smem:[#allocation26_spill]] }
 0xbda   : > { %p1988_p10 = scmp.ge.s32.totalorder %s3147_s15, 2  ;;  %s1573_s17 = sand.u32 1, %s3148_s4  }
 0xbdb   : > { %p3150_p4 = scmp.ne.s32.totalorder %s3149_s2, 0  ;;  %s1574_s20 = scalar_lea.sflag [#allocation5], %s1573_s17 }
 0xbdd   : > { %p1981_p2 = pnand %p1988_p10, %p3150_p4 }
 0xbdf   : > { %2358 = dma.done.wait (!%p1981_p2), %s1574_s20, 128  }
 0xbe0   : > { %2360 = vsyncadd (!%p1981_p2), %s1574_s20, 4294967168  ;;  %s3151_s21 = sld [smem:[#allocation15_spill]]  ;;  %s3152_s24 = sld [smem:[#allocation28_spill]] }
 0xbe6   : > { %s1582_s18 = sand.u32 1, %s3151_s21   ;;  %p3153_p12 = scmp.ne.s32.totalorder %s3152_s24, 0 }
 0xbe7   : > { %s1583_s26 = scalar_lea.sflag [#allocation10], %s1582_s18 }
 0xbe8   : > { %p1984_p7 = pnand %p1988_p10, %p3153_p12 }
 0xbea   : > { %2362 = dma.done.wait (!%p1984_p7), %s1583_s26, 128  }
 0xbeb   : > { %2364 = vsyncadd (!%p1984_p7), %s1583_s26, 4294967168  ;;  %s33_s26 = sadd.s32 1, %s3147_s15   ;;  %s3155_s19 = sld [smem:[#allocation16_spill]] }
 0xbec   : > { %p2998_p3 = scmp.ge.s32.totalorder %s33_s26, 6   ;;  %s3156_s15 = sld [smem:[#allocation33_spill]] }
 0xbed   : > { %s3157_s16 = sld [smem:[#allocation17_spill]]  ;;  %s3158_s17 = sld [smem:[#allocation18_spill]] }
 0xbee   : > { %s3159_s18 = sld [smem:[#allocation31_spill]]  ;;  %s3160_s6 = sld [smem:[#allocation20_spill]] }
 0xbef   : > { %s3161_s20 = sld [smem:[#allocation21_spill]]  ;;  %s3162_s21 = sld [smem:[#allocation32_spill]] }
 0xbf0   : > { %s3163_s22 = sld [smem:[#allocation22_spill]]  ;;  %s3164_s23 = sld [smem:[#allocation23_spill]] }
 0xbf1   : > { %s3165_s24 = sld [smem:[#allocation29_spill]]  ;;  %s3166_s25 = sld [smem:[#allocation30_spill]] }
 0xbf2   : > { %s3167_s13 = smov %s2371_s14  ;;  %s3168_s14 = smov %s3155_s19 }
 0xbf3   :  { %32 = sbr.rel (!%p2998_p3) target bundleno = 26 (0x1a), region = 157 }
 0xbf4   : > { %s3169_s19 = smov %s3160_s6 }
 0xbfa   :  { %1588 = vsyncpa [#allocation4], 1 }
 0xbfb   :  { %1590 = vsyncpa [#allocation4 + $0x1], 1 }
 0xbfc   :  { %1591 = vsyncpa [#allocation7], 1 }
 0xbfd   :  { %1593 = vsyncpa [#allocation7 + $0x1], 1 }
 0xbfe   :  { %1594 = vsyncpa [#allocation5], 1 }
 0xbff   :  { %1596 = vsyncpa [#allocation5 + $0x1], 1 }
 0xc00   :  { %1597 = vsyncpa [#allocation10], 1 }
 0xc01   :  { %1599 = vsyncpa [#allocation10 + $0x1], 1 }

</bundles_post_ra>
